<compile_context>
chip_gen: v5e
topology: v5e:2x2
jax: 0.10.0
libtpu: 0.0.40
codegen_flags: <defaults>
</compile_context>

<pallas_src>
import jax
import jax.numpy as jnp
import numpy as np
from jax import lax
from jax.experimental import pallas as pl
from jax.experimental.pallas import tpu as pltpu


# ---------------------------------------------------------------------------
# Fused kernel
# ---------------------------------------------------------------------------

def fused_caption_kernel(patch_ref, cw_ref, cb_ref, ew_ref, eb_ref,
                         cap_ref, emb_ref, wih_ref, whh_ref, lb_ref,
                         ow_ref, ob_ref, o_ref, xg_scr):
    """Whole ImageCaptioningModel forward in one kernel.

    patch_ref: (B*H*W, 9*Cin)  im2col patches
    cw_ref:    (9*Cin, Cconv)  conv weight          cb_ref: (1, Cconv)
    ew_ref:    (Cconv, E)      encoder fc weight    eb_ref: (1, E)
    cap_ref:   (T*B, 1) int32  caption ids, row index = t*B + b
    emb_ref:   (V, E)          embedding table
    wih_ref:   (E, 4*HP)       W_ih^T, gate-padded  whh_ref: (HP, 4*HP)  W_hh^T padded
    lb_ref:    (1, 4*HP)       b_ih + b_hh, gate-padded
    ow_ref:    (HP, VP)        vocab head weight, padded   ob_ref: (1, VP)
    o_ref:     (T+1, B, VP)    logits (lane-dense, sliced to V in wrapper)
    xg_scr:    (T+1, B, 4*HP)  VMEM scratch holding the hoisted input projections
    """
    t1, batch, _ = o_ref.shape
    seq_t = t1 - 1
    hp = whh_ref.shape[0]
    bhw = patch_ref.shape[0]
    hw = bhw // batch
    vocab = emb_ref.shape[0]
    f32 = jnp.float32

    # ---- EncoderCNN: conv (im2col matmul) + bias + ReLU + global average pool ----
    y = jnp.dot(patch_ref[...], cw_ref[...], preferred_element_type=f32)
    y = jnp.maximum(y + cb_ref[...], 0.0)                         # (B*HW, Cconv)
    # global average pool as an averaging-matrix matmul on the MXU
    rows = lax.broadcasted_iota(jnp.int32, (batch, bhw), 0)
    cols = lax.broadcasted_iota(jnp.int32, (batch, bhw), 1)
    lo = rows * hw
    pool = jnp.where((cols >= lo) & (cols < lo + hw), 1.0 / hw, 0.0).astype(f32)
    pooled = jnp.dot(pool, y, preferred_element_type=f32)         # (B, Cconv)

    # encoder fc (+ReLU); dropout is identity in eval mode
    feats = jnp.maximum(
        jnp.dot(pooled, ew_ref[...], preferred_element_type=f32) + eb_ref[...],
        0.0)                                                      # (B, E)

    # ---- Embedding lookup fused in-kernel (one-hot matmul, exact) ----
    ids = cap_ref[...]                                            # (T*B, 1) int32
    tb = ids.shape[0]
    onehot = (lax.broadcasted_iota(jnp.int32, (tb, vocab), 1) == ids).astype(f32)
    emb = jnp.dot(onehot, emb_ref[...], preferred_element_type=f32)   # (T*B, E)

    # ---- Hoisted LSTM input projection: two big matmuls outside the recurrence ----
    bias = lb_ref[...]                                            # (1, 4*HP)
    xg_feat = jnp.dot(feats, wih_ref[...], preferred_element_type=f32) + bias
    xg_emb = jnp.dot(emb, wih_ref[...], preferred_element_type=f32) + bias
    xg_scr[0] = xg_feat
    for t in range(seq_t):       # static prologue fill; keeps the serial loop slim
        xg_scr[t + 1] = xg_emb[t * batch:(t + 1) * batch, :]

    # ---- LSTM recurrence + fused vocab projection (PyTorch gate order i,f,g,o) ----
    whh = whh_ref[...]
    out_w = ow_ref[...]
    out_b = ob_ref[...]

    def step(t, carry):
        h, c = carry
        gates = xg_scr[t] + jnp.dot(h, whh, preferred_element_type=f32)  # (B, 4*HP)
        i = jax.nn.sigmoid(gates[:, 0 * hp:1 * hp])   # lane-aligned full-tile slices
        f = jax.nn.sigmoid(gates[:, 1 * hp:2 * hp])
        g = jnp.tanh(gates[:, 2 * hp:3 * hp])
        o = jax.nn.sigmoid(gates[:, 3 * hp:4 * hp])
        c = f * c + i * g
        h = o * jnp.tanh(c)
        o_ref[t] = (jnp.dot(h, out_w, preferred_element_type=f32)
                    + out_b).astype(o_ref.dtype)
        return h, c

    h0 = jnp.zeros((batch, hp), f32)
    c0 = jnp.zeros((batch, hp), f32)
    lax.fori_loop(0, t1, step, (h0, c0))


# ---------------------------------------------------------------------------
# Wrapper / glue
# ---------------------------------------------------------------------------

def _round_up(x, m):
    return ((x + m - 1) // m) * m


def _pad_gate_cols(w, h, hp):
    """(rows, 4*h) -> (rows, 4*hp): zero-pad each of the 4 gate blocks to hp lanes."""
    parts = [jnp.pad(w[:, k * h:(k + 1) * h], ((0, 0), (0, hp - h))) for k in range(4)]
    return jnp.concatenate(parts, axis=1)


def im2col_3x3(x_nhwc):
    """(B,H,W,C) -> (B, H*W, 9*C) patches for a SAME 3x3 conv."""
    b, h, w, c = x_nhwc.shape
    xp = jnp.pad(x_nhwc, ((0, 0), (1, 1), (1, 1), (0, 0)))
    pats = jnp.stack(
        [xp[:, kh:kh + h, kw:kw + w, :] for kh in range(3) for kw in range(3)],
        axis=-2)                                   # (B, H, W, 9, C)
    return pats.reshape(b, h * w, 9 * c)


def model_forward(images_nchw, captions, p):
    b = images_nchw.shape[0]
    t = captions.shape[0]
    hidden = p["whh_t"].shape[0]
    vocab = p["out_w"].shape[1]
    hp = _round_up(hidden, 128)   # gate lanes padded to full 128-lane tiles
    vp = _round_up(vocab, 128)    # lane-dense logits output

    # ---- encoder glue: NCHW -> NHWC, im2col ----
    # TODO(synk): for a real backbone, form patches in-kernel from a padded image
    # tile (or use lax.conv) instead of materializing 9x image traffic here.
    x = jnp.transpose(images_nchw, (0, 2, 3, 1)).astype(jnp.float32)
    patches = im2col_3x3(x)                                    # (B, H*W, 9*Cin)
    hw = patches.shape[1]
    patches2d = patches.reshape(b * hw, patches.shape[2])      # (B*H*W, 9*Cin)

    # ---- pad LSTM / output-head weights for lane-aligned gates & logits ----
    wih_p = _pad_gate_cols(p["wih_t"], hidden, hp)                      # (E, 4*HP)
    whh_p = jnp.pad(_pad_gate_cols(p["whh_t"], hidden, hp),
                    ((0, hp - hidden), (0, 0)))                         # (HP, 4*HP)
    lb_p = _pad_gate_cols(p["lstm_b"][None, :], hidden, hp)             # (1, 4*HP)
    ow_p = jnp.pad(p["out_w"], ((0, hp - hidden), (0, vp - vocab)))     # (HP, VP)
    ob_p = jnp.pad(p["out_b"], (0, vp - vocab))[None, :]                # (1, VP)

    cap_flat = captions.reshape(t * b, 1).astype(jnp.int32)             # row = t*B + b

    # TODO(synk): at real sizes give this a parallel grid axis (batch / vocab
    # N-tiles) so v7x's second TensorCore is used, stream the vocab weight in
    # >=512-lane tiles for its 64 MiB VMEM, and store matmul weights as bf16 on
    # v5e/v6e (keeping f32 accumulation).
    out_padded = pl.pallas_call(
        fused_caption_kernel,
        out_shape=jax.ShapeDtypeStruct((t + 1, b, vp), jnp.float32),
        scratch_shapes=[pltpu.VMEM((t + 1, b, 4 * hp), jnp.float32)],
    )(patches2d, p["conv_w"], p["conv_b"][None, :],
      p["enc_w"], p["enc_b"][None, :],
      cap_flat, p["embed_w"],
      wih_p, whh_p, lb_p, ow_p, ob_p)

    return out_padded[:, :, :vocab]                            # (T+1, B, V)


# ---------------------------------------------------------------------------
# Pure-JAX reference for correctness
# ---------------------------------------------------------------------------

def reference_forward(images_nchw, captions, p):
    hp = lax.Precision.HIGHEST
    x = jnp.transpose(images_nchw, (0, 2, 3, 1)).astype(jnp.float32)
    cw = p["conv_w"].reshape(3, 3, x.shape[-1], -1)
    conv = lax.conv_general_dilated(x, cw, (1, 1), "SAME",
                                    dimension_numbers=("NHWC", "HWIO", "NHWC"),
                                    precision=hp)
    conv = jax.nn.relu(conv + p["conv_b"])
    pooled = conv.mean(axis=(1, 2))
    features = jax.nn.relu(
        jnp.dot(pooled, p["enc_w"], precision=hp) + p["enc_b"])
    emb = p["embed_w"][captions]
    seq = jnp.concatenate([features[None], emb], axis=0)
    hidden = p["whh_t"].shape[0]
    batch = features.shape[0]

    def step(carry, x_t):
        h, c = carry
        gates = (jnp.dot(x_t, p["wih_t"], precision=hp)
                 + jnp.dot(h, p["whh_t"], precision=hp) + p["lstm_b"])
        i = jax.nn.sigmoid(gates[:, :hidden])
        f = jax.nn.sigmoid(gates[:, hidden:2 * hidden])
        g = jnp.tanh(gates[:, 2 * hidden:3 * hidden])
        o = jax.nn.sigmoid(gates[:, 3 * hidden:])
        c = f * c + i * g
        h = o * jnp.tanh(c)
        return (h, c), h

    init = (jnp.zeros((batch, hidden)), jnp.zeros((batch, hidden)))
    _, hs = lax.scan(step, init, seq)
    return jnp.dot(hs, p["out_w"], precision=hp) + p["out_b"]


# ---------------------------------------------------------------------------
# Main
# ---------------------------------------------------------------------------

if __name__ == "__main__":
    # Small, module-consistent sizes
    B, CIN, IMG = 2, 3, 16
    CCONV = 8
    EMBED, HIDDEN, VOCAB = 32, 32, 64
    T = 8  # caption length

    key = jax.random.PRNGKey(0)
    ks = jax.random.split(key, 12)

    params = {
        # synthetic conv backbone, weight stored as (9*Cin, Cout) for im2col
        "conv_w": (jax.random.normal(ks[0], (9 * CIN, CCONV)) * 0.1).astype(jnp.float32),
        "conv_b": (jax.random.normal(ks[1], (CCONV,)) * 0.1).astype(jnp.float32),
        # encoder fc: Linear(backbone_feat -> embed_size)
        "enc_w": (jax.random.normal(ks[2], (CCONV, EMBED)) * 0.1).astype(jnp.float32),
        "enc_b": (jax.random.normal(ks[3], (EMBED,)) * 0.1).astype(jnp.float32),
        # decoder
        "embed_w": (jax.random.normal(ks[4], (VOCAB, EMBED)) * 0.1).astype(jnp.float32),
        "wih_t": (jax.random.normal(ks[5], (EMBED, 4 * HIDDEN)) * 0.1).astype(jnp.float32),
        "whh_t": (jax.random.normal(ks[6], (HIDDEN, 4 * HIDDEN)) * 0.1).astype(jnp.float32),
        "lstm_b": (jax.random.normal(ks[7], (4 * HIDDEN,)) * 0.1).astype(jnp.float32),
        "out_w": (jax.random.normal(ks[8], (HIDDEN, VOCAB)) * 0.1).astype(jnp.float32),
        "out_b": (jax.random.normal(ks[9], (VOCAB,)) * 0.1).astype(jnp.float32),
    }

    images = jax.random.normal(ks[10], (B, CIN, IMG, IMG), dtype=jnp.float32)
    captions = jax.random.randint(ks[11], (T, B), 0, VOCAB, dtype=jnp.int32)

    out = jax.jit(model_forward)(images, captions, params)
    out = jax.block_until_ready(out)
    assert out.shape == (T + 1, B, VOCAB), out.shape

    ref = jax.block_until_ready(reference_forward(images, captions, params))
    np.testing.assert_allclose(np.asarray(out), np.asarray(ref),
                               rtol=2e-2, atol=2e-2)

    print("KERNEL_OK")
</pallas_src>

<mosaic_0001>
module attributes {stable_mosaic.version = 11 : i64} {
  func.func @fused_caption_kernel(%arg0: memref<512x27xf32, #tpu.memory_space<vmem>>, %arg1: memref<27x8xf32, #tpu.memory_space<vmem>>, %arg2: memref<1x8xf32, #tpu.memory_space<vmem>>, %arg3: memref<8x32xf32, #tpu.memory_space<vmem>>, %arg4: memref<1x32xf32, #tpu.memory_space<vmem>>, %arg5: memref<16x1xi32, #tpu.memory_space<vmem>>, %arg6: memref<64x32xf32, #tpu.memory_space<vmem>>, %arg7: memref<32x512xf32, #tpu.memory_space<vmem>>, %arg8: memref<128x512xf32, #tpu.memory_space<vmem>>, %arg9: memref<1x512xf32, #tpu.memory_space<vmem>>, %arg10: memref<128x128xf32, #tpu.memory_space<vmem>>, %arg11: memref<1x128xf32, #tpu.memory_space<vmem>>, %arg12: memref<9x2x128xf32, #tpu.memory_space<vmem>>, %arg13: memref<9x2x512xf32, #tpu.memory_space<vmem>>) attributes {dimension_semantics = [], scalar_prefetch = 0 : i64, scratch_operands = 1 : i64, tpu.core_type = #tpu.core_type<tc>} {
    %c0 = arith.constant 0 : index
    %c0_0 = arith.constant 0 : index
    %0 = vector.load %arg0[%c0, %c0_0] : memref<512x27xf32, #tpu.memory_space<vmem>>, vector<512x27xf32>
    %c0_1 = arith.constant 0 : index
    %c0_2 = arith.constant 0 : index
    %1 = vector.load %arg1[%c0_1, %c0_2] : memref<27x8xf32, #tpu.memory_space<vmem>>, vector<27x8xf32>
    %cst = arith.constant dense<0.000000e+00> : vector<512x8xf32>
    %2 = tpu.matmul %0, %1, %cst {dimension_numbers = #tpu.dot_dimension_numbers<[1], [0], [0], [1], [0, 0, 1, 1], [], []>} : vector<512x27xf32>, vector<27x8xf32>, vector<512x8xf32> -> vector<512x8xf32>
    %c0_3 = arith.constant 0 : index
    %c0_4 = arith.constant 0 : index
    %3 = vector.load %arg2[%c0_3, %c0_4] : memref<1x8xf32, #tpu.memory_space<vmem>>, vector<1x8xf32>
    %4 = vector.broadcast %3 : vector<1x8xf32> to vector<512x8xf32>
    %5 = arith.addf %2, %4 : vector<512x8xf32>
    %cst_5 = arith.constant 0.000000e+00 : f32
    %6 = vector.broadcast %cst_5 : f32 to vector<512x8xf32>
    %7 = arith.maximumf %5, %6 : vector<512x8xf32>
    %8 = tpu.iota {dimensions = array<i32: 0>} : vector<2x512xi32>
    %9 = tpu.iota {dimensions = array<i32: 1>} : vector<2x512xi32>
    %c256_i32 = arith.constant 256 : i32
    %10 = vector.broadcast %c256_i32 : i32 to vector<2x512xi32>
    %11 = arith.muli %8, %10 : vector<2x512xi32>
    %12 = arith.cmpi sge, %9, %11 : vector<2x512xi32>
    %c256_i32_6 = arith.constant 256 : i32
    %13 = vector.broadcast %c256_i32_6 : i32 to vector<2x512xi32>
    %14 = arith.addi %11, %13 : vector<2x512xi32>
    %15 = arith.cmpi slt, %9, %14 : vector<2x512xi32>
    %16 = arith.andi %12, %15 : vector<2x512xi1>
    %cst_7 = arith.constant 3.906250e-03 : f32
    %cst_8 = arith.constant 0.000000e+00 : f32
    %17 = vector.broadcast %cst_7 : f32 to vector<2x512xf32>
    %18 = vector.broadcast %cst_8 : f32 to vector<2x512xf32>
    %19 = arith.select %16, %17, %18 : vector<2x512xi1>, vector<2x512xf32>
    %cst_9 = arith.constant dense<0.000000e+00> : vector<2x8xf32>
    %20 = tpu.matmul %19, %7, %cst_9 {dimension_numbers = #tpu.dot_dimension_numbers<[1], [0], [0], [1], [0, 0, 1, 1], [], []>} : vector<2x512xf32>, vector<512x8xf32>, vector<2x8xf32> -> vector<2x8xf32>
    %c0_10 = arith.constant 0 : index
    %c0_11 = arith.constant 0 : index
    %21 = vector.load %arg3[%c0_10, %c0_11] : memref<8x32xf32, #tpu.memory_space<vmem>>, vector<8x32xf32>
    %cst_12 = arith.constant dense<0.000000e+00> : vector<2x32xf32>
    %22 = tpu.matmul %20, %21, %cst_12 {dimension_numbers = #tpu.dot_dimension_numbers<[1], [0], [0], [1], [0, 0, 1, 1], [], []>} : vector<2x8xf32>, vector<8x32xf32>, vector<2x32xf32> -> vector<2x32xf32>
    %c0_13 = arith.constant 0 : index
    %c0_14 = arith.constant 0 : index
    %23 = vector.load %arg4[%c0_13, %c0_14] : memref<1x32xf32, #tpu.memory_space<vmem>>, vector<1x32xf32>
    %24 = vector.broadcast %23 : vector<1x32xf32> to vector<2x32xf32>
    %25 = arith.addf %22, %24 : vector<2x32xf32>
    %cst_15 = arith.constant 0.000000e+00 : f32
    %26 = vector.broadcast %cst_15 : f32 to vector<2x32xf32>
    %27 = arith.maximumf %25, %26 : vector<2x32xf32>
    %c0_16 = arith.constant 0 : index
    %c0_17 = arith.constant 0 : index
    %28 = vector.load %arg5[%c0_16, %c0_17] : memref<16x1xi32, #tpu.memory_space<vmem>>, vector<16x1xi32>
    %29 = tpu.iota {dimensions = array<i32: 1>} : vector<16x64xi32>
    %30 = vector.broadcast %28 : vector<16x1xi32> to vector<16x64xi32>
    %31 = arith.cmpi eq, %29, %30 : vector<16x64xi32>
    %32 = arith.extui %31 : vector<16x64xi1> to vector<16x64xi32>
    %33 = arith.sitofp %32 : vector<16x64xi32> to vector<16x64xf32>
    %c0_18 = arith.constant 0 : index
    %c0_19 = arith.constant 0 : index
    %34 = vector.load %arg6[%c0_18, %c0_19] : memref<64x32xf32, #tpu.memory_space<vmem>>, vector<64x32xf32>
    %cst_20 = arith.constant dense<0.000000e+00> : vector<16x32xf32>
    %35 = tpu.matmul %33, %34, %cst_20 {dimension_numbers = #tpu.dot_dimension_numbers<[1], [0], [0], [1], [0, 0, 1, 1], [], []>} : vector<16x64xf32>, vector<64x32xf32>, vector<16x32xf32> -> vector<16x32xf32>
    %c0_21 = arith.constant 0 : index
    %c0_22 = arith.constant 0 : index
    %36 = vector.load %arg9[%c0_21, %c0_22] : memref<1x512xf32, #tpu.memory_space<vmem>>, vector<1x512xf32>
    %c0_23 = arith.constant 0 : index
    %c0_24 = arith.constant 0 : index
    %37 = vector.load %arg7[%c0_23, %c0_24] : memref<32x512xf32, #tpu.memory_space<vmem>>, vector<32x512xf32>
    %cst_25 = arith.constant dense<0.000000e+00> : vector<2x512xf32>
    %38 = tpu.matmul %27, %37, %cst_25 {dimension_numbers = #tpu.dot_dimension_numbers<[1], [0], [0], [1], [0, 0, 1, 1], [], []>} : vector<2x32xf32>, vector<32x512xf32>, vector<2x512xf32> -> vector<2x512xf32>
    %39 = vector.broadcast %36 : vector<1x512xf32> to vector<2x512xf32>
    %40 = arith.addf %38, %39 : vector<2x512xf32>
    %c0_26 = arith.constant 0 : index
    %c0_27 = arith.constant 0 : index
    %41 = vector.load %arg7[%c0_26, %c0_27] : memref<32x512xf32, #tpu.memory_space<vmem>>, vector<32x512xf32>
    %cst_28 = arith.constant dense<0.000000e+00> : vector<16x512xf32>
    %42 = tpu.matmul %35, %41, %cst_28 {dimension_numbers = #tpu.dot_dimension_numbers<[1], [0], [0], [1], [0, 0, 1, 1], [], []>} : vector<16x32xf32>, vector<32x512xf32>, vector<16x512xf32> -> vector<16x512xf32>
    %43 = vector.broadcast %36 : vector<1x512xf32> to vector<16x512xf32>
    %44 = arith.addf %42, %43 : vector<16x512xf32>
    %c0_29 = arith.constant 0 : index
    %c0_30 = arith.constant 0 : index
    %c0_31 = arith.constant 0 : index
    %45 = vector.load %arg13[%c0_29, %c0_30, %c0_31] : memref<9x2x512xf32, #tpu.memory_space<vmem>>, vector<1x2x512xf32>
    %46 = vector.shape_cast %45 : vector<1x2x512xf32> to vector<2x512xf32>
    %47 = vector.shape_cast %40 : vector<2x512xf32> to vector<1x2x512xf32>
    tpu.vector_store %arg13[%c0_29, %c0_30, %c0_31], %47 {strides = array<i32>} : memref<9x2x512xf32, #tpu.memory_space<vmem>>, vector<1x2x512xf32>,
    %48 = vector.extract_strided_slice %44 {offsets = [0, 0], sizes = [2, 512], strides = [1, 1]} : vector<16x512xf32> to vector<2x512xf32>
    %c1 = arith.constant 1 : index
    %c0_32 = arith.constant 0 : index
    %c0_33 = arith.constant 0 : index
    %49 = vector.load %arg13[%c1, %c0_32, %c0_33] : memref<9x2x512xf32, #tpu.memory_space<vmem>>, vector<1x2x512xf32>
    %50 = vector.shape_cast %49 : vector<1x2x512xf32> to vector<2x512xf32>
    %51 = vector.shape_cast %48 : vector<2x512xf32> to vector<1x2x512xf32>
    tpu.vector_store %arg13[%c1, %c0_32, %c0_33], %51 {strides = array<i32>} : memref<9x2x512xf32, #tpu.memory_space<vmem>>, vector<1x2x512xf32>,
    %52 = vector.extract_strided_slice %44 {offsets = [2, 0], sizes = [2, 512], strides = [1, 1]} : vector<16x512xf32> to vector<2x512xf32>
    %c2 = arith.constant 2 : index
    %c0_34 = arith.constant 0 : index
    %c0_35 = arith.constant 0 : index
    %53 = vector.load %arg13[%c2, %c0_34, %c0_35] : memref<9x2x512xf32, #tpu.memory_space<vmem>>, vector<1x2x512xf32>
    %54 = vector.shape_cast %53 : vector<1x2x512xf32> to vector<2x512xf32>
    %55 = vector.shape_cast %52 : vector<2x512xf32> to vector<1x2x512xf32>
    tpu.vector_store %arg13[%c2, %c0_34, %c0_35], %55 {strides = array<i32>} : memref<9x2x512xf32, #tpu.memory_space<vmem>>, vector<1x2x512xf32>,
    %56 = vector.extract_strided_slice %44 {offsets = [4, 0], sizes = [2, 512], strides = [1, 1]} : vector<16x512xf32> to vector<2x512xf32>
    %c3 = arith.constant 3 : index
    %c0_36 = arith.constant 0 : index
    %c0_37 = arith.constant 0 : index
    %57 = vector.load %arg13[%c3, %c0_36, %c0_37] : memref<9x2x512xf32, #tpu.memory_space<vmem>>, vector<1x2x512xf32>
    %58 = vector.shape_cast %57 : vector<1x2x512xf32> to vector<2x512xf32>
    %59 = vector.shape_cast %56 : vector<2x512xf32> to vector<1x2x512xf32>
    tpu.vector_store %arg13[%c3, %c0_36, %c0_37], %59 {strides = array<i32>} : memref<9x2x512xf32, #tpu.memory_space<vmem>>, vector<1x2x512xf32>,
    %60 = vector.extract_strided_slice %44 {offsets = [6, 0], sizes = [2, 512], strides = [1, 1]} : vector<16x512xf32> to vector<2x512xf32>
    %c4 = arith.constant 4 : index
    %c0_38 = arith.constant 0 : index
    %c0_39 = arith.constant 0 : index
    %61 = vector.load %arg13[%c4, %c0_38, %c0_39] : memref<9x2x512xf32, #tpu.memory_space<vmem>>, vector<1x2x512xf32>
    %62 = vector.shape_cast %61 : vector<1x2x512xf32> to vector<2x512xf32>
    %63 = vector.shape_cast %60 : vector<2x512xf32> to vector<1x2x512xf32>
    tpu.vector_store %arg13[%c4, %c0_38, %c0_39], %63 {strides = array<i32>} : memref<9x2x512xf32, #tpu.memory_space<vmem>>, vector<1x2x512xf32>,
    %64 = vector.extract_strided_slice %44 {offsets = [8, 0], sizes = [2, 512], strides = [1, 1]} : vector<16x512xf32> to vector<2x512xf32>
    %c5 = arith.constant 5 : index
    %c0_40 = arith.constant 0 : index
    %c0_41 = arith.constant 0 : index
    %65 = vector.load %arg13[%c5, %c0_40, %c0_41] : memref<9x2x512xf32, #tpu.memory_space<vmem>>, vector<1x2x512xf32>
    %66 = vector.shape_cast %65 : vector<1x2x512xf32> to vector<2x512xf32>
    %67 = vector.shape_cast %64 : vector<2x512xf32> to vector<1x2x512xf32>
    tpu.vector_store %arg13[%c5, %c0_40, %c0_41], %67 {strides = array<i32>} : memref<9x2x512xf32, #tpu.memory_space<vmem>>, vector<1x2x512xf32>,
    %68 = vector.extract_strided_slice %44 {offsets = [10, 0], sizes = [2, 512], strides = [1, 1]} : vector<16x512xf32> to vector<2x512xf32>
    %c6 = arith.constant 6 : index
    %c0_42 = arith.constant 0 : index
    %c0_43 = arith.constant 0 : index
    %69 = vector.load %arg13[%c6, %c0_42, %c0_43] : memref<9x2x512xf32, #tpu.memory_space<vmem>>, vector<1x2x512xf32>
    %70 = vector.shape_cast %69 : vector<1x2x512xf32> to vector<2x512xf32>
    %71 = vector.shape_cast %68 : vector<2x512xf32> to vector<1x2x512xf32>
    tpu.vector_store %arg13[%c6, %c0_42, %c0_43], %71 {strides = array<i32>} : memref<9x2x512xf32, #tpu.memory_space<vmem>>, vector<1x2x512xf32>,
    %72 = vector.extract_strided_slice %44 {offsets = [12, 0], sizes = [2, 512], strides = [1, 1]} : vector<16x512xf32> to vector<2x512xf32>
    %c7 = arith.constant 7 : index
    %c0_44 = arith.constant 0 : index
    %c0_45 = arith.constant 0 : index
    %73 = vector.load %arg13[%c7, %c0_44, %c0_45] : memref<9x2x512xf32, #tpu.memory_space<vmem>>, vector<1x2x512xf32>
    %74 = vector.shape_cast %73 : vector<1x2x512xf32> to vector<2x512xf32>
    %75 = vector.shape_cast %72 : vector<2x512xf32> to vector<1x2x512xf32>
    tpu.vector_store %arg13[%c7, %c0_44, %c0_45], %75 {strides = array<i32>} : memref<9x2x512xf32, #tpu.memory_space<vmem>>, vector<1x2x512xf32>,
    %76 = vector.extract_strided_slice %44 {offsets = [14, 0], sizes = [2, 512], strides = [1, 1]} : vector<16x512xf32> to vector<2x512xf32>
    %c8 = arith.constant 8 : index
    %c0_46 = arith.constant 0 : index
    %c0_47 = arith.constant 0 : index
    %77 = vector.load %arg13[%c8, %c0_46, %c0_47] : memref<9x2x512xf32, #tpu.memory_space<vmem>>, vector<1x2x512xf32>
    %78 = vector.shape_cast %77 : vector<1x2x512xf32> to vector<2x512xf32>
    %79 = vector.shape_cast %76 : vector<2x512xf32> to vector<1x2x512xf32>
    tpu.vector_store %arg13[%c8, %c0_46, %c0_47], %79 {strides = array<i32>} : memref<9x2x512xf32, #tpu.memory_space<vmem>>, vector<1x2x512xf32>,
    %c0_48 = arith.constant 0 : index
    %c0_49 = arith.constant 0 : index
    %80 = vector.load %arg8[%c0_48, %c0_49] : memref<128x512xf32, #tpu.memory_space<vmem>>, vector<128x512xf32>
    %c0_50 = arith.constant 0 : index
    %c0_51 = arith.constant 0 : index
    %81 = vector.load %arg10[%c0_50, %c0_51] : memref<128x128xf32, #tpu.memory_space<vmem>>, vector<128x128xf32>
    %c0_52 = arith.constant 0 : index
    %c0_53 = arith.constant 0 : index
    %82 = vector.load %arg11[%c0_52, %c0_53] : memref<1x128xf32, #tpu.memory_space<vmem>>, vector<1x128xf32>
    %cst_54 = arith.constant 0.000000e+00 : f32
    %83 = vector.broadcast %cst_54 : f32 to vector<2x128xf32>
    %cst_55 = arith.constant 0.000000e+00 : f32
    %84 = vector.broadcast %cst_55 : f32 to vector<2x128xf32>
    %c0_i32 = arith.constant 0 : i32
    %c9_i32 = arith.constant 9 : i32
    %85 = arith.addi %c0_i32, %c9_i32 : i32
    %c1_i32 = arith.constant 1 : i32
    %86:2 = scf.for %arg14 = %c0_i32 to %85 step %c1_i32 iter_args(%arg15 = %83, %arg16 = %84) -> (vector<2x128xf32>, vector<2x128xf32>)  : i32 {
      %87 = arith.index_cast %arg14 : i32 to index
      %c0_57 = arith.constant 0 : index
      %c0_58 = arith.constant 0 : index
      %88 = vector.load %arg13[%87, %c0_57, %c0_58] : memref<9x2x512xf32, #tpu.memory_space<vmem>>, vector<1x2x512xf32>
      %89 = vector.shape_cast %88 : vector<1x2x512xf32> to vector<2x512xf32>
      %cst_59 = arith.constant dense<0.000000e+00> : vector<2x512xf32>
      %90 = tpu.matmul %arg15, %80, %cst_59 {dimension_numbers = #tpu.dot_dimension_numbers<[1], [0], [0], [1], [0, 0, 1, 1], [], []>} : vector<2x128xf32>, vector<128x512xf32>, vector<2x512xf32> -> vector<2x512xf32>
      %91 = arith.addf %89, %90 : vector<2x512xf32>
      %92 = vector.extract_strided_slice %91 {offsets = [0, 0], sizes = [2, 128], strides = [1, 1]} : vector<2x512xf32> to vector<2x128xf32>
      %93 = arith.negf %92 : vector<2x128xf32>
      %94 = math.exp %93 : vector<2x128xf32>
      %cst_60 = arith.constant 1.000000e+00 : f32
      %95 = vector.broadcast %cst_60 : f32 to vector<2x128xf32>
      %96 = arith.addf %95, %94 : vector<2x128xf32>
      %97 = arith.divf %95, %96 : vector<2x128xf32>
      %98 = vector.extract_strided_slice %91 {offsets = [0, 128], sizes = [2, 128], strides = [1, 1]} : vector<2x512xf32> to vector<2x128xf32>
      %99 = arith.negf %98 : vector<2x128xf32>
      %100 = math.exp %99 : vector<2x128xf32>
      %cst_61 = arith.constant 1.000000e+00 : f32
      %101 = vector.broadcast %cst_61 : f32 to vector<2x128xf32>
      %102 = arith.addf %101, %100 : vector<2x128xf32>
      %103 = arith.divf %101, %102 : vector<2x128xf32>
      %104 = vector.extract_strided_slice %91 {offsets = [0, 256], sizes = [2, 128], strides = [1, 1]} : vector<2x512xf32> to vector<2x128xf32>
      %105 = math.tanh %104 : vector<2x128xf32>
      %106 = vector.extract_strided_slice %91 {offsets = [0, 384], sizes = [2, 128], strides = [1, 1]} : vector<2x512xf32> to vector<2x128xf32>
      %107 = arith.negf %106 : vector<2x128xf32>
      %108 = math.exp %107 : vector<2x128xf32>
      %cst_62 = arith.constant 1.000000e+00 : f32
      %109 = vector.broadcast %cst_62 : f32 to vector<2x128xf32>
      %110 = arith.addf %109, %108 : vector<2x128xf32>
      %111 = arith.divf %109, %110 : vector<2x128xf32>
      %112 = arith.mulf %103, %arg16 : vector<2x128xf32>
      %113 = arith.mulf %97, %105 : vector<2x128xf32>
      %114 = arith.addf %112, %113 : vector<2x128xf32>
      %115 = math.tanh %114 : vector<2x128xf32>
      %116 = arith.mulf %111, %115 : vector<2x128xf32>
      %cst_63 = arith.constant dense<0.000000e+00> : vector<2x128xf32>
      %117 = tpu.matmul %116, %81, %cst_63 {dimension_numbers = #tpu.dot_dimension_numbers<[1], [0], [0], [1], [0, 0, 1, 1], [], []>} : vector<2x128xf32>, vector<128x128xf32>, vector<2x128xf32> -> vector<2x128xf32>
      %118 = vector.broadcast %82 : vector<1x128xf32> to vector<2x128xf32>
      %119 = arith.addf %117, %118 : vector<2x128xf32>
      %120 = arith.index_cast %arg14 : i32 to index
      %c0_64 = arith.constant 0 : index
      %c0_65 = arith.constant 0 : index
      %121 = vector.load %arg12[%120, %c0_64, %c0_65] : memref<9x2x128xf32, #tpu.memory_space<vmem>>, vector<1x2x128xf32>
      %122 = vector.shape_cast %121 : vector<1x2x128xf32> to vector<2x128xf32>
      %123 = vector.shape_cast %119 : vector<2x128xf32> to vector<1x2x128xf32>
      tpu.vector_store %arg12[%120, %c0_64, %c0_65], %123 {strides = array<i32>} : memref<9x2x128xf32, #tpu.memory_space<vmem>>, vector<1x2x128xf32>,
      scf.yield %116, %114 : vector<2x128xf32>, vector<2x128xf32>
    }
    %c9_i32_56 = arith.constant 9 : i32
    return
  }
}

</mosaic_0001>

<bundles_post_ra>
// kernel: model_forward.1
= control target key start
LH: loop header
LB: loop body
LE: loop exit
PB: predicated region body
PF: predicated region fallthrough
CT: control target
= control target key end

     0   :  { %17 = vsyncpa [#allocation4], 0  ;;  %vm307_vm0 = vcmask 1042432   ;;  %vm114_vm1 = vcmask 220160   ;;  %vm741_vm15 = vcmask 523264   ;;  %s2783_s0 = inlined_call_operand.vmem [shape: f32[512,27], index: 0, kind: input, shape index: {}]   ;;  %s2784_s1 = inlined_call_operand.vmem [shape: f32[27,8], index: 1, kind: input, shape index: {}]   ;;  %s2785_s2 = inlined_call_operand.vmem [shape: f32[1,8], index: 2, kind: input, shape index: {}]   ;;  %s2786_s3 = inlined_call_operand.vmem [shape: f32[8,32], index: 3, kind: input, shape index: {}]   ;;  %s2787_s4 = inlined_call_operand.vmem [shape: f32[1,32], index: 4, kind: input, shape index: {}]   ;;  %s2788_s5 = inlined_call_operand.vmem [shape: s32[16,1], index: 5, kind: input, shape index: {}]   ;;  %s2789_s6 = inlined_call_operand.vmem [shape: f32[64,32], index: 6, kind: input, shape index: {}]   ;;  %s2790_s7 = inlined_call_operand.vmem [shape: f32[32,512], index: 7, kind: input, shape index: {}]   ;;  %s2791_s8 = inlined_call_operand.vmem [shape: f32[128,512], index: 8, kind: input, shape index: {}]   ;;  %s2792_s9 = inlined_call_operand.vmem [shape: f32[1,512], index: 9, kind: input, shape index: {}]   ;;  %s2793_s10 = inlined_call_operand.vmem [shape: f32[128,128], index: 10, kind: input, shape index: {}]   ;;  %s2794_s11 = inlined_call_operand.vmem [shape: f32[1,128], index: 11, kind: input, shape index: {}]   ;;  %s2795_s12 = inlined_call_operand.hbm [shape: f32[9,2,128], index: 12, kind: output, shape index: {}]  }
   0x1   :  { %v109_v0 = vld [vmem:[%s2784_s1 + $0x18] sm:$0x7]  ;;  %v108_v1 = vld [vmem:[%s2784_s1 + $0x10] sm:$0xff]  ;;  %v107_v2 = vld [vmem:[%s2784_s1 + $0x8] sm:$0xff] }
   0x2   :  { %1388 = vmatpush.msk.msra.mxu0 %vm307_vm0, %v109_v0  ;;  %1481 = vmatpush.msk.msra.mxu1 %vm307_vm0, %v109_v0  ;;  %v106_v3 = vld [vmem:[%s2784_s1] sm:$0xff]  ;;  %v75_v6 = vld [vmem:[%s2783_s0 + $0x108] sm:$0xff]  ;;  %v76_v10 = vld [vmem:[%s2783_s0 + $0x110] sm:$0xff] }
   0x3   :  { %1482 = vmatpush.msk.msra.mxu2 %vm307_vm0, %v109_v0  ;;  %1483 = vmatpush.msk.msra.mxu3 %vm307_vm0, %v109_v0  ;;  %v42_v4 = vld [vmem:[%s2783_s0] sm:$0xff]  ;;  %v91_v7 = vld [vmem:[%s2783_s0 + $0x188] sm:$0xff]  ;;  %v92_v11 = vld [vmem:[%s2783_s0 + $0x190] sm:$0xff] }
   0x4   :  { %324 = vmatpush.msra.mxu0 %v108_v1  ;;  %1484 = vmatpush.msra.mxu1 %v108_v1  ;;  %v66_v5 = vld [vmem:[%s2783_s0 + $0xc0] sm:$0xff]  ;;  %v43_v8 = vld [vmem:[%s2783_s0 + $0x8] sm:$0xff]  ;;  %v44_v12 = vld [vmem:[%s2783_s0 + $0x10] sm:$0xff] }
   0x5   :  { %1485 = vmatpush.msra.mxu2 %v108_v1  ;;  %1486 = vmatpush.msra.mxu3 %v108_v1  ;;  %v67_v9 = vld [vmem:[%s2783_s0 + $0xc8] sm:$0xff]  ;;  %v68_v13 = vld [vmem:[%s2783_s0 + $0xd0] sm:$0xff]  ;;  %v77_v14 = vld [vmem:[%s2783_s0 + $0x118] sm:$0xff] }
   0x6   :  { %325 = vmatpush.msra.mxu0 %v107_v2  ;;  %1487 = vmatpush.msra.mxu1 %v107_v2  ;;  %v93_v15 = vld [vmem:[%s2783_s0 + $0x198] sm:$0xff]  ;;  %v78_v18 = vld [vmem:[%s2783_s0 + $0x120] sm:$0xff]  ;;  %v79_v22 = vld [vmem:[%s2783_s0 + $0x128] sm:$0xff] }
   0x7   :  { %1488 = vmatpush.msra.mxu2 %v107_v2  ;;  %1489 = vmatpush.msra.mxu3 %v107_v2  ;;  %v45_v16 = vld [vmem:[%s2783_s0 + $0x18] sm:$0xff]  ;;  %v94_v19 = vld [vmem:[%s2783_s0 + $0x1a0] sm:$0xff]  ;;  %v95_v23 = vld [vmem:[%s2783_s0 + $0x1a8] sm:$0xff] }
   0x8   :  { %326 = vmatpush.msra.mxu0 %v106_v3  ;;  %1490 = vmatpush.msra.mxu1 %v106_v3  ;;  %v69_v17 = vld [vmem:[%s2783_s0 + $0xd8] sm:$0xff]  ;;  %v46_v20 = vld [vmem:[%s2783_s0 + $0x20] sm:$0xff]  ;;  %v47_v24 = vld [vmem:[%s2783_s0 + $0x28] sm:$0xff] }
   0x9   :  { %1491 = vmatpush.msra.mxu2 %v106_v3  ;;  %1389 = vmatmul.msk.f32.vlgmr.msra.gmra.mxu0 %vm114_vm1, %v42_v4  ;;  %v70_v21 = vld [vmem:[%s2783_s0 + $0xe0] sm:$0xff]  ;;  %v71_v25 = vld [vmem:[%s2783_s0 + $0xe8] sm:$0xff]  ;;  %v80_v26 = vld [vmem:[%s2783_s0 + $0x130] sm:$0xff] }
   0xa   :  { %1413 = vmatmul.msk.f32.vlgmr.msra.gmra.mxu1 %vm114_vm1, %v66_v5  ;;  %1422 = vmatmul.msk.f32.vlgmr.msra.gmra.mxu2 %vm114_vm1, %v75_v6  ;;  %v96_v27 = vld [vmem:[%s2783_s0 + $0x1b0] sm:$0xff]  ;;  %v81_v30 = vld [vmem:[%s2783_s0 + $0x138] sm:$0xff]  ;;  %v82_v34 = vld [vmem:[%s2783_s0 + $0x140] sm:$0xff] }
   0xb   :  { %1492 = vmatpush.msra.mxu3 %v106_v3  ;;  %v48_v28 = vld [vmem:[%s2783_s0 + $0x30] sm:$0xff]  ;;  %v97_v31 = vld [vmem:[%s2783_s0 + $0x1b8] sm:$0xff]  ;;  %v98_v35 = vld [vmem:[%s2783_s0 + $0x1c0] sm:$0xff] }
   0xc   :  { %1438 = vmatmul.msk.f32.vlgmr.msra.gmra.mxu3 %vm114_vm1, %v91_v7  ;;  %v72_v29 = vld [vmem:[%s2783_s0 + $0xf0] sm:$0xff]  ;;  %v49_v32 = vld [vmem:[%s2783_s0 + $0x38] sm:$0xff]  ;;  %v50_v36 = vld [vmem:[%s2783_s0 + $0x40] sm:$0xff] }
   0xd   :  { %v73_v33 = vld [vmem:[%s2783_s0 + $0xf8] sm:$0xff]  ;;  %v83_v37 = vld [vmem:[%s2783_s0 + $0x148] sm:$0xff]  ;;  %v84_v40 = vld [vmem:[%s2783_s0 + $0x150] sm:$0xff] }
   0xe   :  { %v99_v38 = vld [vmem:[%s2783_s0 + $0x1c8] sm:$0xff]  ;;  %v100_v41 = vld [vmem:[%s2783_s0 + $0x1d0] sm:$0xff]  ;;  %v85_v43 = vld [vmem:[%s2783_s0 + $0x158] sm:$0xff] }
   0xf   :  { %v51_v39 = vld [vmem:[%s2783_s0 + $0x48] sm:$0xff]  ;;  %v52_v42 = vld [vmem:[%s2783_s0 + $0x50] sm:$0xff]  ;;  %v101_v44 = vld [vmem:[%s2783_s0 + $0x1d8] sm:$0xff] }
  0x10   :  { %v53_v45 = vld [vmem:[%s2783_s0 + $0x58] sm:$0xff]  ;;  %v86_v46 = vld [vmem:[%s2783_s0 + $0x160] sm:$0xff]  ;;  %v87_v49 = vld [vmem:[%s2783_s0 + $0x168] sm:$0xff] }
  0x11   :  { %1390 = vmatmul.msk.f32.gmra.mxu0 %vm114_vm1, %v43_v8  ;;  %v102_v47 = vld [vmem:[%s2783_s0 + $0x1e0] sm:$0xff]  ;;  %v103_v50 = vld [vmem:[%s2783_s0 + $0x1e8] sm:$0xff]  ;;  %v88_v52 = vld [vmem:[%s2783_s0 + $0x170] sm:$0xff] }
  0x12   :  { %1414 = vmatmul.msk.f32.gmra.mxu1 %vm114_vm1, %v67_v9  ;;  %1423 = vmatmul.msk.f32.gmra.mxu2 %vm114_vm1, %v76_v10  ;;  %v54_v48 = vld [vmem:[%s2783_s0 + $0x60] sm:$0xff]  ;;  %v55_v51 = vld [vmem:[%s2783_s0 + $0x68] sm:$0xff]  ;;  %v104_v53 = vld [vmem:[%s2783_s0 + $0x1f0] sm:$0xff] }
  0x13   :  { %v56_v54 = vld [vmem:[%s2783_s0 + $0x70] sm:$0xff]  ;;  %v89_v55 = vld [vmem:[%s2783_s0 + $0x178] sm:$0xff]  ;;  %v58_v59 = vld [vmem:[%s2783_s0 + $0x80] sm:$0xff] }
  0x14   :  { %1439 = vmatmul.msk.f32.gmra.mxu3 %vm114_vm1, %v92_v11  ;;  %v105_v56 = vld [vmem:[%s2783_s0 + $0x1f8] sm:$0xff]  ;;  %v59_v63 = vld [vmem:[%s2783_s0 + $0x88] sm:$0xff]  ;;  %v60_v4 = vld [vmem:[%s2783_s0 + $0x90] sm:$0xff] }
  0x15   :  { %v57_v57 = vld [vmem:[%s2783_s0 + $0x78] sm:$0xff] }
  0x16   :  { %v61_v9 = vld [vmem:[%s2783_s0 + $0x98] sm:$0xff] }
  0x19   :  { %1391 = vmatmul.msk.f32.gmra.mxu0 %vm114_vm1, %v44_v12 }
  0x1a   :  { %1415 = vmatmul.msk.f32.gmra.mxu1 %vm114_vm1, %v68_v13  ;;  %1424 = vmatmul.msk.f32.gmra.mxu2 %vm114_vm1, %v77_v14  ;;  %v62_v14 = vld [vmem:[%s2783_s0 + $0xa0] sm:$0xff] }
  0x1c   :  { %1440 = vmatmul.msk.f32.gmra.mxu3 %vm114_vm1, %v93_v15 }
  0x21   :  { %1392 = vmatmul.msk.f32.gmra.mxu0 %vm114_vm1, %v45_v16 }
  0x22   :  { %1416 = vmatmul.msk.f32.gmra.mxu1 %vm114_vm1, %v69_v17  ;;  %1425 = vmatmul.msk.f32.gmra.mxu2 %vm114_vm1, %v78_v18 }
  0x24   :  { %1441 = vmatmul.msk.f32.gmra.mxu3 %vm114_vm1, %v94_v19  ;;  %v63_v19 = vld [vmem:[%s2783_s0 + $0xa8] sm:$0xff] }
  0x29   :  { %1393 = vmatmul.msk.f32.gmra.mxu0 %vm114_vm1, %v46_v20 }
  0x2a   :  { %1417 = vmatmul.msk.f32.gmra.mxu1 %vm114_vm1, %v70_v21  ;;  %1426 = vmatmul.msk.f32.gmra.mxu2 %vm114_vm1, %v79_v22  ;;  %v74_v21 = vld [vmem:[%s2783_s0 + $0x100] sm:$0xff] }
  0x2b   :  { %v90_v22 = vld [vmem:[%s2783_s0 + $0x180] sm:$0xff] }
  0x2c   :  { %1442 = vmatmul.msk.f32.gmra.mxu3 %vm114_vm1, %v95_v23 }
  0x31   :  { %1394 = vmatmul.msk.f32.gmra.mxu0 %vm114_vm1, %v47_v24 }
  0x32   :  { %1418 = vmatmul.msk.f32.gmra.mxu1 %vm114_vm1, %v71_v25  ;;  %1427 = vmatmul.msk.f32.gmra.mxu2 %vm114_vm1, %v80_v26  ;;  %v64_v26 = vld [vmem:[%s2783_s0 + $0xb0] sm:$0xff] }
  0x34   :  { %1443 = vmatmul.msk.f32.gmra.mxu3 %vm114_vm1, %v96_v27 }
  0x39   :  { %1395 = vmatmul.msk.f32.gmra.mxu0 %vm114_vm1, %v48_v28  ;;  %v1968_v28 = vld [vmem:[%s2785_s2] ss:$0 sm:$0xff] }
  0x3a   :  { %1419 = vmatmul.msk.f32.gmra.mxu1 %vm114_vm1, %v72_v29  ;;  %1428 = vmatmul.msk.f32.gmra.mxu2 %vm114_vm1, %v81_v30 }
  0x3c   :  { %1444 = vmatmul.msk.f32.gmra.mxu3 %vm114_vm1, %v97_v31 }
  0x41   :  { %1396 = vmatmul.msk.f32.gmra.mxu0 %vm114_vm1, %v49_v32 }
  0x42   :  { %1420 = vmatmul.msk.f32.gmra.mxu1 %vm114_vm1, %v73_v33  ;;  %1429 = vmatmul.msk.f32.gmra.mxu2 %vm114_vm1, %v82_v34  ;;  %v65_v33 = vld [vmem:[%s2783_s0 + $0xb8] sm:$0xff] }
  0x44   :  { %1445 = vmatmul.msk.f32.gmra.mxu3 %vm114_vm1, %v98_v35 }
  0x49   :  { %1397 = vmatmul.msk.f32.gmra.mxu0 %vm114_vm1, %v50_v36 }
  0x4a   :  { %1430 = vmatmul.msk.f32.gmra.mxu2 %vm114_vm1, %v83_v37  ;;  %1421 = vmatmul.msk.f32.gmra.mxu1 %vm114_vm1, %v74_v21 }
  0x4c   :  { %1446 = vmatmul.msk.f32.gmra.mxu3 %vm114_vm1, %v99_v38 }
  0x51   :  { %1398 = vmatmul.msk.f32.gmra.mxu0 %vm114_vm1, %v51_v39 }
  0x52   :  { %1431 = vmatmul.msk.f32.gmra.mxu2 %vm114_vm1, %v84_v40 }
  0x54   :  { %1447 = vmatmul.msk.f32.gmra.mxu3 %vm114_vm1, %v100_v41 }
  0x59   :  { %1399 = vmatmul.msk.f32.gmra.mxu0 %vm114_vm1, %v52_v42 }
  0x5a   :  { %1432 = vmatmul.msk.f32.gmra.mxu2 %vm114_vm1, %v85_v43 }
  0x5c   :  { %1448 = vmatmul.msk.f32.gmra.mxu3 %vm114_vm1, %v101_v44 }
  0x61   :  { %1400 = vmatmul.msk.f32.gmra.mxu0 %vm114_vm1, %v53_v45 }
  0x62   :  { %1433 = vmatmul.msk.f32.gmra.mxu2 %vm114_vm1, %v86_v46 }
  0x64   :  { %1449 = vmatmul.msk.f32.gmra.mxu3 %vm114_vm1, %v102_v47 }
  0x69   :  { %1401 = vmatmul.msk.f32.gmra.mxu0 %vm114_vm1, %v54_v48 }
  0x6a   :  { %1434 = vmatmul.msk.f32.gmra.mxu2 %vm114_vm1, %v87_v49 }
  0x6c   :  { %1450 = vmatmul.msk.f32.gmra.mxu3 %vm114_vm1, %v103_v50 }
  0x71   :  { %1402 = vmatmul.msk.f32.gmra.mxu0 %vm114_vm1, %v55_v51 }
  0x72   :  { %1435 = vmatmul.msk.f32.gmra.mxu2 %vm114_vm1, %v88_v52 }
  0x74   :  { %1451 = vmatmul.msk.f32.gmra.mxu3 %vm114_vm1, %v104_v53 }
  0x79   :  { %1403 = vmatmul.msk.f32.gmra.mxu0 %vm114_vm1, %v56_v54 }
  0x7a   :  { %1436 = vmatmul.msk.f32.gmra.mxu2 %vm114_vm1, %v89_v55 }
  0x7c   :  { %1452 = vmatmul.msk.f32.gmra.mxu3 %vm114_vm1, %v105_v56 }
  0x81   :  { %1404 = vmatmul.msk.f32.gmra.mxu0 %vm114_vm1, %v57_v57 }
  0x82   :  { %1437 = vmatmul.msk.f32.gmra.mxu2 %vm114_vm1, %v90_v22 }
  0x86   :  { %v1891_v58 = vpop.f32.mrf.mxu0 }
  0x87   :  { %v1896_v60 = vpop.f32.mrf.mxu1 }
  0x88   :  { %v401_v49 = vadd.f32 %v1968_v28, %v1896_v60 }
  0x89   :  { %1405 = vmatmul.msk.f32.gmra.mxu0 %vm114_vm1, %v58_v59 }
  0x8a   :  { %v544_v53 = vmax.f32 %v401_v49, 0.0 }
  0x8d   :  { %v1899_v61 = vpop.f32.mrf.mxu2 }
  0x8e   :  { %v1901_v62 = vpop.f32.mrf.mxu0 }
  0x8f   :  { %v403_v0 = vpop.f32.mrf.mxu1  ;;  %v1906_v1 = vpop.f32.mrf.mxu3 }
  0x90   :  { %v404_v47 = vadd.f32 %v1968_v28, %v403_v0 }
  0x91   :  { %1406 = vmatmul.msk.f32.gmra.mxu0 %vm114_vm1, %v59_v63 }
  0x92   :  { %v545_v51 = vmax.f32 %v404_v47, 0.0 }
  0x95   :  { %v1909_v2 = vpop.f32.mrf.mxu2 }
  0x96   :  { %v1911_v3 = vpop.f32.mrf.mxu0 }
  0x97   :  { %v406_v5 = vpop.f32.mrf.mxu1  ;;  %v1916_v6 = vpop.f32.mrf.mxu3 }
  0x98   :  { %v407_v43 = vadd.f32 %v1968_v28, %v406_v5 }
  0x99   :  { %1407 = vmatmul.msk.f32.gmra.mxu0 %vm114_vm1, %v60_v4 }
  0x9a   :  { %v546_v50 = vmax.f32 %v407_v43, 0.0 }
  0x9d   :  { %v1919_v7 = vpop.f32.mrf.mxu2 }
  0x9e   :  { %v1921_v8 = vpop.f32.mrf.mxu0 }
  0x9f   :  { %v409_v10 = vpop.f32.mrf.mxu1  ;;  %v1926_v11 = vpop.f32.mrf.mxu3 }
  0xa0   :  { %v410_v40 = vadd.f32 %v1968_v28, %v409_v10 }
  0xa1   :  { %1408 = vmatmul.msk.f32.gmra.mxu0 %vm114_vm1, %v61_v9 }
  0xa2   :  { %v547_v48 = vmax.f32 %v410_v40, 0.0 }
  0xa5   :  { %v1929_v12 = vpop.f32.mrf.mxu2 }
  0xa6   :  { %v1931_v13 = vpop.f32.mrf.mxu0 }
  0xa7   :  { %v412_v15 = vpop.f32.mrf.mxu1  ;;  %v1937_v16 = vpop.f32.mrf.mxu3 }
  0xa8   :  { %v413_v37 = vadd.f32 %v1968_v28, %v412_v15 }
  0xa9   :  { %1409 = vmatmul.msk.f32.gmra.mxu0 %vm114_vm1, %v62_v14 }
  0xaa   :  { %v548_v44 = vmax.f32 %v413_v37, 0.0 }
  0xad   :  { %v1939_v17 = vpop.f32.mrf.mxu2 }
  0xae   :  { %v1941_v18 = vpop.f32.mrf.mxu0 }
  0xaf   :  { %v415_v20 = vpop.f32.mrf.mxu1  ;;  %v1954_v23 = vpop.f32.mrf.mxu3 }
  0xb0   :  { %v416_v35 = vadd.f32 %v1968_v28, %v415_v20 }
  0xb1   :  { %1410 = vmatmul.msk.f32.gmra.mxu0 %vm114_vm1, %v63_v19 }
  0xb2   :  { %v549_v41 = vmax.f32 %v416_v35, 0.0 }
  0xb5   :  { %v1957_v24 = vpop.f32.mrf.mxu2 }
  0xb6   :  { %v1959_v25 = vpop.f32.mrf.mxu0 }
  0xb7   :  { %v418_v27 = vpop.f32.mrf.mxu1  ;;  %v1972_v30 = vpop.f32.mrf.mxu3 }
  0xb8   :  { %v419_v31 = vadd.f32 %v1968_v28, %v418_v27 }
  0xb9   :  { %1411 = vmatmul.msk.f32.gmra.mxu0 %vm114_vm1, %v64_v26 }
  0xba   :  { %v550_v38 = vmax.f32 %v419_v31, 0.0 }
  0xbd   :  { %v1970_v29 = vpop.f32.mrf.mxu2 }
  0xbe   :  { %v1975_v32 = vpop.f32.mrf.mxu0 }
  0xbf   :  { %v421_v34 = vpop.f32.mrf.mxu1  ;;  %v1990_v46 = vpop.f32.mrf.mxu3 }
  0xc0   :  { %v422_v36 = vadd.f32 %v1968_v28, %v421_v34 }
  0xc1   :  { %1412 = vmatmul.msk.f32.gmra.mxu0 %vm114_vm1, %v65_v33  ;;  %vm694_vm1 = vcmask 64512  }
  0xc2   :  { %v551_v39 = vmax.f32 %v422_v36, 0.0 }
  0xc4   :  { %629 = vmatpush.msrb.mxu2 %v551_v39 }
  0xc5   :  { %v1985_v42 = vpop.f32.mrf.mxu2 }
  0xc6   :  { %630 = vmatpush.msrb.mxu2 %v550_v38  ;;  %v1988_v45 = vpop.f32.mrf.mxu0 }
  0xc7   :  { %v1995_v55 = vpop.f32.mrf.mxu3 }
  0xc8   :  { %631 = vmatpush.msrb.mxu2 %v549_v41 }
  0xca   :  { %632 = vmatpush.msrb.mxu2 %v548_v44 }
  0xcc   :  { %633 = vmatpush.msrb.mxu2 %v547_v48 }
  0xcd   :  { %v451_v52 = vpop.f32.mrf.mxu2 }
  0xce   :  { %634 = vmatpush.msrb.mxu2 %v546_v50  ;;  %v355_v54 = vpop.f32.mrf.mxu0 }
  0xcf   :  { %v1997_v59 = vpop.f32.mrf.mxu3 }
  0xd0   :  { %635 = vmatpush.msrb.mxu2 %v545_v51 }
  0xd2   :  { %636 = vmatpush.msrb.mxu2 %v544_v53 }
  0xd5   :  { %v454_v56 = vpop.f32.mrf.mxu2 }
  0xd6   :  { %v358_v57 = vpop.f32.mrf.mxu0  ;;  %v455_v48 = vadd.f32 %v1968_v28, %v454_v56  ;;  %v356_v56 = vadd.f32 %v1968_v28, %v355_v54 }
  0xd7   :  { %v1999_v60 = vpop.f32.mrf.mxu3 }
  0xd8   :  { %v529_v54 = vmax.f32 %v356_v56, 0.0 }
  0xdd   :  { %v457_v63 = vpop.f32.mrf.mxu2 }
  0xde   :  { %v361_v0 = vpop.f32.mrf.mxu0  ;;  %v458_v40 = vadd.f32 %v1968_v28, %v457_v63  ;;  %v359_v63 = vadd.f32 %v1968_v28, %v358_v57  ;;  %v446_v57 = vadd.f32 %v1968_v28, %v1970_v29  ;;  %v440_v29 = vadd.f32 %v1968_v28, %v1939_v17 }
  0xdf   :  { %v2001_v14 = vpop.f32.mrf.mxu3  ;;  %v362_v50 = vadd.f32 %v1968_v28, %v361_v0  ;;  %v449_v0 = vadd.f32 %v1968_v28, %v1985_v42  ;;  %v443_v42 = vadd.f32 %v1968_v28, %v1957_v24  ;;  %v437_v24 = vadd.f32 %v1968_v28, %v1929_v12 }
  0xe0   :  { %v563_v53 = vmax.f32 %v458_v40, 0.0  ;;  %v434_v17 = vadd.f32 %v1968_v28, %v1919_v7  ;;  %v431_v12 = vadd.f32 %v1968_v28, %v1909_v2 }
  0xe1   :  { %v556_v40 = vmax.f32 %v437_v24, 0.0 }
  0xe2   :  { %v554_v2 = vmax.f32 %v431_v12, 0.0 }
  0xe5   :  { %v460_v4 = vpop.f32.mrf.mxu2 }
  0xe6   :  { %v364_v5 = vpop.f32.mrf.mxu0  ;;  %v461_v35 = vadd.f32 %v1968_v28, %v460_v4 }
  0xe7   :  { %v2003_v20 = vpop.f32.mrf.mxu3  ;;  %v365_v43 = vadd.f32 %v1968_v28, %v364_v5  ;;  %v452_v5 = vadd.f32 %v1968_v28, %v451_v52  ;;  %v350_v52 = vadd.f32 %v1968_v28, %v1975_v32  ;;  %v344_v32 = vadd.f32 %v1968_v28, %v1941_v18 }
  0xe8   :  { %v564_v49 = vmax.f32 %v461_v35, 0.0  ;;  %v338_v18 = vadd.f32 %v1968_v28, %v1921_v8  ;;  %v332_v8 = vadd.f32 %v1968_v28, %v1901_v62 }
  0xe9   :  { %v527_v35 = vmax.f32 %v350_v52, 0.0  ;;  %v584_v52 = vlaneseq }
  0xed   :  { %v463_v9 = vpop.f32.mrf.mxu2 }
  0xee   :  { %v367_v10 = vpop.f32.mrf.mxu0  ;;  %v464_v26 = vadd.f32 %v1968_v28, %v463_v9  ;;  %v532_v9 = vmax.f32 %v365_v43, 0.0 }
  0xef   :  { %v368_v38 = vadd.f32 %v1968_v28, %v367_v10  ;;  %v2014_v47 = vpop.f32.mrf.mxu3  ;;  %v562_v10 = vmax.f32 %v455_v48, 0.0  ;;  %v555_v48 = vmax.f32 %v434_v17, 0.0  ;;  %v1593_v17 = vmov 0  }
  0xf0   :  { %v565_v41 = vmax.f32 %v464_v26, 0.0  ;;  %v512_v62 = vadd.f32 %v1968_v28, %v2014_v47  ;;  %v503_v47 = vadd.f32 %v1968_v28, %v1999_v60  ;;  %1523 = vset.pattern.permute.xlu0 %v1593_v17  ;;  %v786_v17 = vld [vmem:[%s2790_s7 + $0x70] sm:$0xff] }
  0xf1   :  { %v533_v51 = vmax.f32 %v368_v38, 0.0  ;;  %v557_v38 = vmax.f32 %v440_v29, 0.0 }
  0xf5   :  { %v466_v15 = vpop.f32.mrf.mxu2 }
  0xf6   :  { %v370_v19 = vpop.f32.mrf.mxu0  ;;  %v467_v21 = vadd.f32 %v1968_v28, %v466_v15  ;;  %v531_v15 = vmax.f32 %v362_v50, 0.0 }
  0xf7   :  { %v371_v33 = vadd.f32 %v1968_v28, %v370_v19  ;;  %v353_v19 = vadd.f32 %v1968_v28, %v1988_v45  ;;  %v514_v26 = vpop.f32.mrf.mxu3  ;;  %v347_v45 = vadd.f32 %v1968_v28, %v1959_v25  ;;  %v341_v25 = vadd.f32 %v1968_v28, %v1931_v13 }
  0xf8   :  { %v566_v36 = vmax.f32 %v467_v21, 0.0  ;;  %v530_v21 = vmax.f32 %v359_v63, 0.0  ;;  %v335_v13 = vadd.f32 %v1968_v28, %v1911_v3  ;;  %v329_v3 = vadd.f32 %v1968_v28, %v1891_v58 }
  0xf9   :  { %v534_v44 = vmax.f32 %v371_v33, 0.0  ;;  %v528_v33 = vmax.f32 %v353_v19, 0.0  ;;  %v524_v43 = vmax.f32 %v341_v25, 0.0  ;;  %v515_v63 = vadd.f32 %v1968_v28, %v514_v26 }
  0xfa   :  { %v509_v58 = vadd.f32 %v1968_v28, %v2003_v20  ;;  %v497_v20 = vadd.f32 %v1968_v28, %v1995_v55  ;;  %v494_v26 = vadd.f32 %v1968_v28, %v1990_v46  ;;  %v424_v55 = vpop.f32.mrf.mxu1 }
  0xfb   :  { %v582_v56 = vmax.f32 %v515_v63, 0.0 }
  0xfc   :  { %v580_v19 = vmax.f32 %v509_v58, 0.0  ;;  %v575_v29 = vmax.f32 %v494_v26, 0.0  ;;  %v784_v26 = vld [vmem:[%s2790_s7 + $0x60] sm:$0xff] }
  0xfd   :  { %v469_v22 = vpop.f32.mrf.mxu2 }
  0xfe   :  { %v470_v27 = vadd.f32 %v1968_v28, %v469_v22  ;;  %v373_v31 = vpop.f32.mrf.mxu0  ;;  %v561_v22 = vmax.f32 %v452_v5, 0.0 }
  0xff   :  { %v374_v34 = vadd.f32 %v1968_v28, %v373_v31  ;;  %v517_v7 = vpop.f32.mrf.mxu3 }
 0x100   :  { %v567_v37 = vmax.f32 %v470_v27, 0.0  ;;  %v560_v27 = vmax.f32 %v449_v0, 0.0  ;;  %v518_v50 = vadd.f32 %v1968_v28, %v517_v7  ;;  %v506_v0 = vadd.f32 %v1968_v28, %v2001_v14 }
 0x101   :  { %v535_v39 = vmax.f32 %v374_v34, 0.0  ;;  %v559_v34 = vmax.f32 %v446_v57, 0.0  ;;  %v500_v57 = vadd.f32 %v1968_v28, %v1997_v59  ;;  %v585_v14 = vshrl.u32 %v584_v52, 7 }
 0x102   :  { %649 = vmatpush.msrb.mxu3 %v567_v37  ;;  %v526_v37 = vmax.f32 %v347_v45, 0.0  ;;  %v576_v59 = vmax.f32 %v497_v20, 0.0 }
 0x103   :  { %609 = vmatpush.msrb.mxu1 %v535_v39  ;;  %v525_v39 = vmax.f32 %v344_v32, 0.0  ;;  %v577_v60 = vmax.f32 %v500_v57, 0.0  ;;  %v2088_v32 = vand.u32 127, %v584_v52  ;;  %v1594_v52 = vmov 0.0  }
 0x104   :  { %650 = vmatpush.msrb.mxu3 %v566_v36  ;;  %v558_v36 = vmax.f32 %v443_v42, 0.0  ;;  %v491_v42 = vadd.f32 %v1968_v28, %v1972_v30  ;;  %v485_v30 = vadd.f32 %v1968_v28, %v1937_v16  ;;  %v719_v16 = vld [vmem:[%s2788_s5] sm:$0xff] }
 0x105   :  { %610 = vmatpush.msrb.mxu1 %v534_v44  ;;  %v428_v44 = vadd.f32 %v1968_v28, %v1899_v61  ;;  %v521_v61 = vmax.f32 %v332_v8, 0.0  ;;  %v590_v12 = vadd.s32 384, %v2088_v32  ;;  %722 = vperm.xlu0 %1523, %v719_v16   ;;  %v785_v16 = vld [vmem:[%s2790_s7 + $0x68] sm:$0xff] }
 0x106   :  { %651 = vmatpush.msrb.mxu3 %v565_v41  ;;  %v2018_v4 = vpop.f32.mrf.mxu0 }
 0x107   :  { %611 = vmatpush.msrb.mxu1 %v533_v51  ;;  %v522_v51 = vmax.f32 %v335_v13, 0.0  ;;  %v377_v58 = vadd.f32 %v1968_v28, %v2018_v4  ;;  %v738_v4 = vld [vmem:[%s2789_s6 + $0x28] sm:$0xff] }
 0x108   :  { %652 = vmatpush.msrb.mxu3 %v564_v49  ;;  %v523_v49 = vmax.f32 %v338_v18, 0.0 }
 0x109   :  { %612 = vmatpush.msrb.mxu1 %v532_v9  ;;  %v583_v9 = vmax.f32 %v518_v50, 0.0 }
 0x10a   :  { %653 = vmatpush.msrb.mxu3 %v563_v53  ;;  %v553_v53 = vmax.f32 %v428_v44, 0.0 }
 0x10b   :  { %613 = vmatpush.msrb.mxu1 %v531_v15  ;;  %v581_v15 = vmax.f32 %v512_v62, 0.0 }
 0x10c   :  { %654 = vmatpush.msrb.mxu3 %v562_v10  ;;  %v520_v10 = vmax.f32 %v329_v3, 0.0 }
 0x10d   :  { %614 = vmatpush.msrb.mxu1 %v530_v21 }
 0x10e   :  { %655 = vmatpush.msrb.mxu3 %v561_v22  ;;  %v2033_v31 = vpop.f32.mrf.mxu0  ;;  %v579_v22 = vmax.f32 %v506_v0, 0.0  ;;  %v737_v0 = vld [vmem:[%s2789_s6 + $0x20] sm:$0xff] }
 0x10f   :  { %615 = vmatpush.msrb.mxu1 %v529_v54  ;;  %v578_v54 = vmax.f32 %v503_v47, 0.0  ;;  %v736_v47 = vld [vmem:[%s2789_s6 + $0x18] sm:$0xff] }
 0x110   :  { %656 = vmatpush.msrb.mxu3 %v560_v27  ;;  %v2083_v27 = vmul.u32 256, %v585_v14 }
 0x111   :  { %616 = vmatpush.msrb.mxu1 %v528_v33  ;;  %v488_v33 = vadd.f32 %v1968_v28, %v1954_v23  ;;  %v589_v23 = vadd.s32 256, %v2088_v32 }
 0x112   :  { %657 = vmatpush.msrb.mxu3 %v559_v34  ;;  %v425_v34 = vadd.f32 %v1968_v28, %v424_v55  ;;  %v2091_v46 = vadd.s32 256, %v2083_v27  ;;  %vm592_vm2 = vcmp.ge.s32.totalorder %v2088_v32, %v2083_v27  ;;  %vm595_vm8 = vcmp.ge.s32.totalorder %v590_v12, %v2083_v27 }
 0x113   :  { %617 = vmatpush.msrb.mxu1 %v527_v35  ;;  %v574_v35 = vmax.f32 %v491_v42, 0.0  ;;  %v573_v25 = vmax.f32 %v488_v33, 0.0  ;;  %vm594_vm5 = vcmp.ge.s32.totalorder %v589_v23, %v2083_v27 }
 0x114   :  { %658 = vmatpush.msrb.mxu3 %v558_v36  ;;  %v552_v24 = vmax.f32 %v425_v34, 0.0  ;;  %vm597_vm3 = vcmp.lt.s32.totalorder %v2088_v32, %v2091_v46  ;;  %v482_v36 = vadd.f32 %v1968_v28, %v1926_v11  ;;  %vm599_vm6 = vcmp.lt.s32.totalorder %v589_v23, %v2091_v46  ;;  %v780_v34 = vld [vmem:[%s2790_s7 + $0x40] sm:$0xff]  ;;  %v779_v23 = vld [vmem:[%s2790_s7 + $0x38] sm:$0xff] }
 0x115   :  { %618 = vmatpush.msrb.mxu1 %v526_v37  ;;  %vm601_vm4 = vmand %vm592_vm2, %vm597_vm3  ;;  %v1592_v37 = vmov 0.00390625   ;;  %v479_v11 = vadd.f32 %v1968_v28, %v1916_v6  ;;  %vm600_vm9 = vcmp.lt.s32.totalorder %v590_v12, %v2091_v46  ;;  %vm797_vm2 = vcmask 261120   ;;  %v774_v12 = vld [vmem:[%s2790_s7 + $0x10] sm:$0xff] }
 0x116   :  { %659 = vmatpush.msrb.mxu3 %v557_v38  ;;  %v2051_v41 = vpop.f32.mrf.mxu0  ;;  %vm603_vm7 = vmand %vm594_vm5, %vm599_vm6  ;;  %v572_v38 = vmax.f32 %v485_v30, 0.0  ;;  %v571_v13 = vmax.f32 %v482_v36, 0.0  ;;  %vm986_vm3 = vcmask 1041408   ;;  %vm988_vm5 = vcmask 1045508  }
 0x117   :  { %619 = vmatpush.msrb.mxu1 %v525_v39  ;;  %v472_v39 = vpop.f32.mrf.mxu2  ;;  %v570_v7 = vmax.f32 %v479_v11, 0.0  ;;  %vm604_vm10 = vmand %vm595_vm8, %vm600_vm9  ;;  %v777_v11 = vld [vmem:[%s2790_s7 + $0x28] sm:$0xff] }
 0x118   :  { %660 = vmatpush.msrb.mxu3 %v556_v40  ;;  %v476_v40 = vadd.f32 %v1968_v28, %v1906_v1 }
 0x119   :  { %620 = vmatpush.msrb.mxu1 %v524_v43  ;;  %v473_v43 = vadd.f32 %v1968_v28, %v472_v39  ;;  %v778_v39 = vld [vmem:[%s2790_s7 + $0x30] sm:$0xff] }
 0x11a   :  { %661 = vmatpush.msrb.mxu3 %v555_v48  ;;  %v569_v6 = vmax.f32 %v476_v40, 0.0  ;;  %v720_v48 = vld [vmem:[%s2788_s5 + $0x8] sm:$0xff]  ;;  %v1525_v40 = vld [vmem:[%s2787_s4] ss:$0 sm:$0xff] }
 0x11b   :  { %621 = vmatpush.msrb.mxu1 %v523_v49  ;;  %v568_v44 = vmax.f32 %v473_v43, 0.0  ;;  %725 = vperm.xlu0 %1523, %v720_v48   ;;  %v771_v48 = vld [vmem:[%s2792_s9] sm:$0xf] }
 0x11c   :  { %662 = vmatpush.msrb.mxu3 %v554_v2 }
 0x11d   :  { %622 = vmatpush.msrb.mxu1 %v522_v51 }
 0x11e   :  { %663 = vmatpush.msrb.mxu3 %v553_v53  ;;  %v2065_v5 = vpop.f32.mrf.mxu0 }
 0x11f   :  { %623 = vmatpush.msrb.mxu1 %v521_v61  ;;  %v386_v53 = vadd.f32 %v1968_v28, %v2065_v5  ;;  %v383_v61 = vadd.f32 %v1968_v28, %v2051_v41  ;;  %v536_v41 = vmax.f32 %v377_v58, 0.0 }
 0x120   :  { %664 = vmatpush.msrb.mxu3 %v552_v24  ;;  %v783_v24 = vld [vmem:[%s2790_s7 + $0x58] sm:$0xff] }
 0x121   :  { %624 = vmatpush.msrb.mxu1 %v520_v10  ;;  %1455 = vmatmul.msk.f32.vlgmr.msrb.gmra.mxu3 %vm603_vm7, %v1592_v37  ;;  %v380_v10 = vadd.f32 %v1968_v28, %v2033_v31  ;;  %v740_v31 = vld [vmem:[%s2789_s6 + $0x38] sm:$0xff] }
 0x122   :  { %1453 = vmatmul.msk.f32.vlgmr.msrb.gmra.mxu1 %vm601_vm4, %v1592_v37  ;;  %756 = vmatpush.msra.mxu3 %v740_v31  ;;  %vm990_vm4 = vcmask 1043456  }
 0x123   :  { %669 = vmatpush.msra.mxu1 %v583_v9  ;;  %v588_v9 = vadd.s32 128, %v2088_v32  ;;  %v537_v5 = vmax.f32 %v380_v10, 0.0 }
 0x125   :  { %670 = vmatpush.msra.mxu1 %v582_v56  ;;  %v539_v56 = vmax.f32 %v386_v53, 0.0  ;;  %vm593_vm11 = vcmp.ge.s32.totalorder %v588_v9, %v2083_v27  ;;  %vm598_vm12 = vcmp.lt.s32.totalorder %v588_v9, %v2091_v46  ;;  %v772_v46 = vld [vmem:[%s2790_s7] sm:$0xff]  ;;  %v791_v53 = vperm.slane %v771_v48, 2 }
 0x126   :  { %v2073_v21 = vpop.f32.mrf.mxu0  ;;  %vm602_vm13 = vmand %vm593_vm11, %vm598_vm12 }
 0x127   :  { %671 = vmatpush.msra.mxu1 %v581_v15  ;;  %v389_v3 = vadd.f32 %v1968_v28, %v2073_v21  ;;  %v538_v15 = vmax.f32 %v383_v61, 0.0  ;;  %v734_v21 = vld [vmem:[%s2789_s6 + $0x8] sm:$0xff] }
 0x129   :  { %672 = vmatpush.msra.mxu1 %v580_v19  ;;  %v540_v62 = vmax.f32 %v389_v3, 0.0  ;;  %v735_v19 = vld [vmem:[%s2789_s6 + $0x10] sm:$0xff] }
 0x12b   :  { %673 = vmatpush.msra.mxu1 %v579_v22  ;;  %v733_v22 = vld [vmem:[%s2789_s6] sm:$0xff] }
 0x12d   :  { %674 = vmatpush.msra.mxu1 %v578_v54  ;;  %v689_v54 = vld [vmem:[%s2786_s3] sm:$0xff] }
 0x12e   :  { %v391_v45 = vpop.f32.mrf.mxu0 }
 0x12f   :  { %675 = vmatpush.msra.mxu1 %v577_v60  ;;  %v392_v2 = vadd.f32 %v1968_v28, %v391_v45 }
 0x131   :  { %676 = vmatpush.msra.mxu1 %v576_v59  ;;  %v541_v63 = vmax.f32 %v392_v2, 0.0 }
 0x133   :  { %677 = vmatpush.msra.mxu1 %v575_v29 }
 0x135   :  { %678 = vmatpush.msra.mxu1 %v574_v35  ;;  %v787_v35 = vld [vmem:[%s2790_s7 + $0x78] sm:$0xff] }
 0x136   :  { %v394_v18 = vpop.f32.mrf.mxu0 }
 0x137   :  { %679 = vmatpush.msra.mxu1 %v573_v25  ;;  %v395_v1 = vadd.f32 %v1968_v28, %v394_v18  ;;  %v775_v25 = vld [vmem:[%s2790_s7 + $0x18] sm:$0xff]  ;;  %v773_v18 = vld [vmem:[%s2790_s7 + $0x8] sm:$0xff] }
 0x139   :  { %680 = vmatpush.msra.mxu1 %v572_v38  ;;  %v542_v51 = vmax.f32 %v395_v1, 0.0  ;;  %v782_v38 = vld [vmem:[%s2790_s7 + $0x50] sm:$0xff]  ;;  %v792_v1 = vperm.slane %v771_v48, 3 }
 0x13b   :  { %681 = vmatpush.msra.mxu1 %v571_v13 }
 0x13d   :  { %682 = vmatpush.msra.mxu1 %v570_v7 }
 0x13e   :  { %v397_v8 = vpop.f32.mrf.mxu0 }
 0x13f   :  { %683 = vmatpush.msra.mxu1 %v569_v6  ;;  %v398_v49 = vadd.f32 %v1968_v28, %v397_v8  ;;  %v739_v28 = vld [vmem:[%s2789_s6 + $0x30] sm:$0xff]  ;;  %v789_v8 = vperm.slane %v771_v48, 0 }
 0x140   :  { %757 = vmatpush.msra.mxu3 %v739_v28 }
 0x141   :  { %684 = vmatpush.msra.mxu1 %v568_v44  ;;  %v543_v50 = vmax.f32 %v398_v49, 0.0 }
 0x142   :  { %1456 = vmatmul.msk.f32.vlgmr.msra.gmra.mxu1 %vm604_vm10, %v1592_v37  ;;  %758 = vmatpush.msra.mxu3 %v738_v4 }
 0x143   :  { %637 = vmatpush.msrb.mxu2 %v543_v50  ;;  %899 = vmatpush.msrb.mxu1 %v784_v26 }
 0x144   :  { %759 = vmatpush.msra.mxu3 %v737_v0 }
 0x145   :  { %638 = vmatpush.msrb.mxu2 %v542_v51  ;;  %900 = vmatpush.msrb.mxu1 %v780_v34 }
 0x146   :  { %760 = vmatpush.msra.mxu3 %v736_v47 }
 0x147   :  { %639 = vmatpush.msrb.mxu2 %v541_v63 }
 0x148   :  { %761 = vmatpush.msra.mxu3 %v735_v19 }
 0x149   :  { %640 = vmatpush.msrb.mxu2 %v540_v62  ;;  %v790_v62 = vperm.slane %v771_v48, 1  ;;  %v2337_v48 = vld [vmem:[%s2791_s8 + $0x80] sm:$0xff] }
 0x14a   :  { %762 = vmatpush.msra.mxu3 %v734_v21 }
 0x14b   :  { %641 = vmatpush.msrb.mxu2 %v539_v56 }
 0x14c   :  { %763 = vmatpush.msra.mxu3 %v733_v22 }
 0x14d   :  { %642 = vmatpush.msrb.mxu2 %v538_v15 }
 0x14e   :  { %873 = vmatpush.msrb.mxu3 %v787_v35 }
 0x14f   :  { %643 = vmatpush.msrb.mxu2 %v537_v5 }
 0x150   :  { %874 = vmatpush.msrb.mxu3 %v783_v24 }
 0x151   :  { %644 = vmatpush.msrb.mxu2 %v536_v41 }
 0x152   :  { %1454 = vmatmul.msk.f32.vlgmr.msrb.gmra.mxu2 %vm602_vm13, %v1592_v37  ;;  %875 = vmatpush.msrb.mxu3 %v779_v23  ;;  %v781_v37 = vld [vmem:[%s2790_s7 + $0x48] sm:$0xff] }
 0x153   :  { %713 = vmatpush.msra.mxu2 %v689_v54 }
 0x154   :  { %876 = vmatpush.msrb.mxu3 %v775_v25 }
 0x155   :  { %813 = vmatpush.msrb.mxu2 %v784_v26 }
 0x157   :  { %814 = vmatpush.msrb.mxu2 %v780_v34 }
 0x177   :  { %v723_v57 = vpop.permute.xlu0 %722 }
 0x178   :  { %vm727_vm14 = vcmp.eq.s32.totalorder %v2088_v32, %v723_v57 }
 0x179   :  { %v1458_v20 = vsel %vm727_vm14, 1.0, %v1594_v52 }
 0x17a   :  { %1460 = vmatmul.msk.f32.vlgmr.msra.gmra.mxu3 %vm741_vm15, %v1458_v20 }
 0x17b   :  { %945 = vmatpush.msra.mxu3 %v786_v17 }
 0x17d   :  { %946 = vmatpush.msra.mxu3 %v782_v38 }
 0x17f   :  { %947 = vmatpush.msra.mxu3 %v778_v39 }
 0x181   :  { %948 = vmatpush.msra.mxu3 %v774_v12 }
 0x18d   :  { %v726_v14 = vpop.permute.xlu0 %725 }
 0x18e   :  { %vm728_vm0 = vcmp.eq.s32.totalorder %v2088_v32, %v726_v14  ;;  %v776_v32 = vld [vmem:[%s2790_s7 + $0x20] sm:$0xff] }
 0x18f   :  { %v1459_v60 = vsel %vm728_vm0, 1.0, %v1594_v52  ;;  %815 = vmatpush.msrb.mxu2 %v776_v32  ;;  %901 = vmatpush.msrb.mxu1 %v776_v32 }
 0x190   :  { %1461 = vmatmul.msk.f32.gmra.mxu3 %vm741_vm15, %v1459_v60 }
 0x191   :  { %816 = vmatpush.msrb.mxu2 %v772_v46  ;;  %902 = vmatpush.msrb.mxu1 %v772_v46 }
 0x193   :  { %968 = vmatpush.msra.mxu1 %v787_v35 }
 0x195   :  { %969 = vmatpush.msra.mxu1 %v783_v24 }
 0x197   :  { %970 = vmatpush.msra.mxu1 %v779_v23 }
 0x199   :  { %971 = vmatpush.msra.mxu1 %v775_v25  ;;  %v2262_v25 = vld [vmem:[%s2791_s8 + $0x8] sm:$0xff] }
 0x19a   :  { %2797 = vst [vmem:[#allocation7_spill] sm:$0xff] %v2262_v25  ;;  %v2561_v25 = vld [vmem:[%s2791_s8 + $0x1e0] sm:$0xff] }
 0x19f   :  { %v626_v42 = vpop.f32.mrf.mxu1 }
 0x1a4   :  { %v666_v59 = vpop.f32.mrf.mxu3 }
 0x1bf   :  { %v686_v33 = vpop.f32.mrf.mxu1 }
 0x1d5   :  { %v646_v27 = vpop.f32.mrf.mxu2 }
 0x1d6   :  { %v647_v45 = vadd.f32 %v646_v27, %v626_v42 }
 0x1d8   :  { %v667_v55 = vadd.f32 %v666_v59, %v647_v45 }
 0x1da   :  { %v687_v29 = vadd.f32 %v686_v33, %v667_v55 }
 0x1dc   :  { %1457 = vmatmul.msk.f32.vlgmr.msra.gmra.mxu2 %vm694_vm1, %v687_v29 }
 0x1dd   :  { %833 = vmatpush.msra.mxu2 %v785_v16 }
 0x1df   :  { %834 = vmatpush.msra.mxu2 %v781_v37 }
 0x1e1   :  { %835 = vmatpush.msra.mxu2 %v777_v11 }
 0x1e3   :  { %836 = vmatpush.msra.mxu2 %v773_v18 }
 0x1fd   :  { %v765_v30 = vpop.f32.mrf.mxu3 }
 0x1fe   :  { %1466 = vmatmul.msk.f32.vlgmr.msrb.gmra.mxu1 %vm797_vm2, %v765_v30 }
 0x213   :  { %v768_v36 = vpop.f32.mrf.mxu3 }
 0x214   :  { %1467 = vmatmul.msk.f32.gmra.mxu1 %vm797_vm2, %v768_v36 }
 0x21c   :  { %1472 = vmatmul.msk.f32.vlgmr.msra.gmra.mxu1 %vm797_vm2, %v765_v30 }
 0x224   :  { %1473 = vmatmul.msk.f32.gmra.mxu1 %vm797_vm2, %v768_v36 }
 0x25f   :  { %v715_v13 = vpop.f32.mrf.mxu2 }
 0x260   :  { %v716_v43 = vadd.f32 %v1525_v40, %v715_v13  ;;  %v2307_v40 = vld [vmem:[%s2791_s8 + $0x50] sm:$0xff]  ;;  %v2312_v13 = vld [vmem:[%s2791_s8 + $0x58] sm:$0xff] }
 0x261   :  { %2804 = vst [vmem:[#allocation14_spill] sm:$0xff] %v2312_v13 }
 0x262   :  { %v718_v7 = vmax.f32 %v716_v43, 0.0  ;;  %v2317_v43 = vld [vmem:[%s2791_s8 + $0x60] sm:$0xff] }
 0x264   :  { %1462 = vmatmul.msk.f32.vlgmr.msrb.gmra.mxu2 %vm797_vm2, %v718_v7  ;;  %1465 = vmatmul.msk.f32.vlgmr.msrb.gmra.mxu3 %vm797_vm2, %v718_v7 }
 0x265   :  { %853 = vmatpush.msrb.mxu2 %v786_v17  ;;  %v2277_v17 = vld [vmem:[%s2791_s8 + $0x20] sm:$0xff] }
 0x266   :  { %2800 = vst [vmem:[#allocation10_spill] sm:$0xff] %v2277_v17  ;;  %v2588_v17 = vld [vmem:[%s2793_s10 + $0x8] sm:$0xff] }
 0x267   :  { %854 = vmatpush.msrb.mxu2 %v782_v38  ;;  %v2287_v38 = vld [vmem:[%s2791_s8 + $0x30] sm:$0xff]  ;;  %2826 = vst [vmem:[#allocation36_spill] sm:$0xff] %v2588_v17  ;;  %v2609_v17 = vld [vmem:[%s2793_s10 + $0x28] sm:$0xff] }
 0x268   :  { %2830 = vst [vmem:[#allocation40_spill] sm:$0xff] %v2609_v17  ;;  %v2640_v17 = vld [vmem:[%s2793_s10 + $0x58] sm:$0xff] }
 0x269   :  { %855 = vmatpush.msrb.mxu2 %v778_v39  ;;  %v2297_v39 = vld [vmem:[%s2791_s8 + $0x40] sm:$0xff]  ;;  %2836 = vst [vmem:[#allocation46_spill] sm:$0xff] %v2640_v17 }
 0x26b   :  { %856 = vmatpush.msrb.mxu2 %v774_v12  ;;  %v2302_v12 = vld [vmem:[%s2791_s8 + $0x48] sm:$0xff] }
 0x26c   :  { %1463 = vmatmul.msk.f32.vlgmr.msra.gmra.mxu2 %vm797_vm2, %v718_v7  ;;  %1470 = vmatmul.msk.f32.vlgmr.msra.gmra.mxu3 %vm797_vm2, %v765_v30  ;;  %2803 = vst [vmem:[#allocation13_spill] sm:$0xff] %v2302_v12 }
 0x26d   :  { %922 = vmatpush.msra.mxu2 %v785_v16  ;;  %v2267_v16 = vld [vmem:[%s2791_s8 + $0x10] sm:$0xff] }
 0x26e   :  { %2798 = vst [vmem:[#allocation8_spill] sm:$0xff] %v2267_v16  ;;  %v2577_v16 = vld [vmem:[%s2791_s8 + $0x1f8] sm:$0xff] }
 0x26f   :  { %923 = vmatpush.msra.mxu2 %v781_v37  ;;  %v2272_v37 = vld [vmem:[%s2791_s8 + $0x18] sm:$0xff]  ;;  %2824 = vst [vmem:[#allocation34_spill] sm:$0xff] %v2577_v16 }
 0x270   :  { %2799 = vst [vmem:[#allocation9_spill] sm:$0xff] %v2272_v37  ;;  %v2572_v37 = vld [vmem:[%s2791_s8 + $0x1f0] sm:$0xff] }
 0x271   :  { %924 = vmatpush.msra.mxu2 %v777_v11  ;;  %v2282_v11 = vld [vmem:[%s2791_s8 + $0x28] sm:$0xff] }
 0x272   :  { %2801 = vst [vmem:[#allocation11_spill] sm:$0xff] %v2282_v11  ;;  %v2593_v11 = vld [vmem:[%s2793_s10 + $0x10] sm:$0xff] }
 0x273   :  { %925 = vmatpush.msra.mxu2 %v773_v18  ;;  %v2292_v18 = vld [vmem:[%s2791_s8 + $0x38] sm:$0xff]  ;;  %2827 = vst [vmem:[#allocation37_spill] sm:$0xff] %v2593_v11 }
 0x274   :  { %1464 = vmatmul.msk.f32.vlgmr.msrb.gmra.mxu2 %vm797_vm2, %v718_v7  ;;  %1471 = vmatmul.msk.f32.gmra.mxu3 %vm797_vm2, %v768_v36  ;;  %2802 = vst [vmem:[#allocation12_spill] sm:$0xff] %v2292_v18  ;;  %v2322_v7 = vld [vmem:[%s2791_s8 + $0x68] sm:$0xff]  ;;  %v2620_v11 = vld [vmem:[%s2793_s10 + $0x38] sm:$0xff] }
 0x275   :  { %2805 = vst [vmem:[#allocation15_spill] sm:$0xff] %v2322_v7 }
 0x276   :  { %2832 = vst [vmem:[#allocation42_spill] sm:$0xff] %v2620_v11  ;;  %v2650_v11 = vld [vmem:[%s2793_s10 + $0x68] sm:$0xff] }
 0x277   :  { %2838 = vst [vmem:[#allocation48_spill] sm:$0xff] %v2650_v11  ;;  %v2669_v11 = vmov 0.0  }
 0x27b   :  { %v904_v6 = vpop.f32.mrf.mxu1 }
 0x27c   :  { %1468 = vmatmul.msk.f32.vlgmr.msra.gmra.mxu2 %vm797_vm2, %v765_v30  ;;  %v905_v2 = vadd.f32 %v904_v6, %v789_v8  ;;  %v2327_v6 = vld [vmem:[%s2791_s8 + $0x70] sm:$0xff] }
 0x27d   :  { %2806 = vst [vmem:[#allocation16_spill] sm:$0xff] %v2327_v6 }
 0x27e   :  { %1007 = vst.sshfl [vmem:[#allocation1] sm:$0xff pattern:$0x73625140] %v905_v2 }
 0x284   :  { %1469 = vmatmul.msk.f32.gmra.mxu2 %vm797_vm2, %v768_v36  ;;  %v2257_v36 = vld [vmem:[%s2791_s8] sm:$0xff] }
 0x285   :  { %2796 = vst [vmem:[#allocation6_spill] sm:$0xff] %v2257_v36  ;;  %v2556_v36 = vld [vmem:[%s2791_s8 + $0x1d8] sm:$0xff] }
 0x291   :  { %v907_v44 = vpop.f32.mrf.mxu1 }
 0x292   :  { %v2242_v29 = vadd.f32 %v907_v44, %v789_v8  ;;  %v2332_v44 = vld [vmem:[%s2791_s8 + $0x78] sm:$0xff] }
 0x299   :  { %v973_v49 = vpop.f32.mrf.mxu1 }
 0x29a   :  { %v974_v50 = vadd.f32 %v973_v49, %v792_v1  ;;  %v2352_v49 = vld [vmem:[%s2791_s8 + $0x98] sm:$0xff] }
 0x29c   :  { %1010 = vst.sshfl [vmem:[#allocation1 + $0x18] sm:$0xff pattern:$0x73625140] %v974_v50  ;;  %v1000_v22 = vrot.slane %v974_v50, 2 }
 0x2a1   :  { %v976_v54 = vpop.f32.mrf.mxu1 }
 0x2a2   :  { %v2237_v27 = vadd.f32 %v976_v54, %v792_v1  ;;  %v2486_v54 = vld [vmem:[%s2791_s8 + $0x168] sm:$0xff] }
 0x2a4   :  { %v1040_v32 = vrot.slane %v2237_v27, 2 }
 0x2e7   :  { %v818_v3 = vpop.f32.mrf.mxu2  ;;  %v878_v51 = vpop.f32.mrf.mxu3 }
 0x2e8   :  { %v879_v56 = vadd.f32 %v878_v51, %v792_v1  ;;  %v819_v41 = vadd.f32 %v818_v3, %v789_v8  ;;  %v2342_v8 = vld [vmem:[%s2791_s8 + $0x88] sm:$0xff]  ;;  %v2347_v1 = vld [vmem:[%s2791_s8 + $0x90] sm:$0xff] }
 0x2e9   :  { %2807 = vst [vmem:[#allocation17_spill] sm:$0xff] %v2342_v8  ;;  %v2362_v3 = vld [vmem:[%s2791_s8 + $0xa8] sm:$0xff]  ;;  %v2367_v51 = vld [vmem:[%s2791_s8 + $0xb0] sm:$0xff] }
 0x2ea   :  { %v985_v28 = vrot.slane %v879_v56, 2  ;;  %2808 = vst [vmem:[#allocation18_spill] sm:$0xff] %v2347_v1  ;;  %v2404_v56 = vld [vmem:[%s2791_s8 + $0xe8] sm:$0xff] }
 0x2eb   :  { %2810 = vst [vmem:[#allocation20_spill] sm:$0xff] %v2362_v3 }
 0x2ef   :  { %v838_v63 = vpop.f32.mrf.mxu2  ;;  %v950_v61 = vpop.f32.mrf.mxu3 }
 0x2f0   :  { %v951_v9 = vadd.f32 %v950_v61, %v791_v53  ;;  %v839_v10 = vadd.f32 %v838_v63, %v790_v62  ;;  %v2377_v63 = vld [vmem:[%s2791_s8 + $0xc0] sm:$0xff]  ;;  %v2382_v61 = vld [vmem:[%s2791_s8 + $0xc8] sm:$0xff] }
 0x2f2   :  { %1009 = vst.sshfl [vmem:[#allocation1 + $0x10] sm:$0xff pattern:$0x73625140] %v951_v9  ;;  %v983_v15 = vrot.slane %v839_v10, 6  ;;  %v999_v57 = vrot.slane %v951_v9, 4  ;;  %v2398_v10 = vld [vmem:[%s2791_s8 + $0xe0] sm:$0xff] }
 0x2f3   :  { %2812 = vst [vmem:[#allocation22_spill] sm:$0xff] %v2398_v10 }
 0x2f4   :  { %v987_v4 = vsel %vm986_vm3, %v819_v41, %v983_v15  ;;  %v1002_v26 = vsel %vm988_vm5, %v999_v57, %v1000_v22  ;;  %v2414_v15 = vld [vmem:[%s2791_s8 + $0xf8] sm:$0xff]  ;;  %v2425_v41 = vld [vmem:[%s2791_s8 + $0x108] sm:$0xff]  ;;  %v2471_v22 = vld [vmem:[%s2791_s8 + $0x150] sm:$0xff] }
 0x2f5   :  { %2813 = vst [vmem:[#allocation23_spill] sm:$0xff] %v2414_v15  ;;  %v2466_v57 = vld [vmem:[%s2791_s8 + $0x148] sm:$0xff] }
 0x2f6   :  { %2819 = vst [vmem:[#allocation29_spill] sm:$0xff] %v2471_v22 }
 0x2f7   :  { %v858_v58 = vpop.f32.mrf.mxu2  ;;  %v953_v52 = vpop.f32.mrf.mxu3 }
 0x2f8   :  { %v859_v5 = vadd.f32 %v858_v58, %v791_v53  ;;  %v2234_v60 = vadd.f32 %v953_v52, %v791_v53  ;;  %v2372_v53 = vld [vmem:[%s2791_s8 + $0xb8] sm:$0xff]  ;;  %v2409_v58 = vld [vmem:[%s2791_s8 + $0xf0] sm:$0xff] }
 0x2f9   :  { %v2476_v52 = vld [vmem:[%s2791_s8 + $0x158] sm:$0xff] }
 0x2fa   :  { %v984_v31 = vrot.slane %v859_v5, 4  ;;  %v1039_v33 = vrot.slane %v2234_v60, 4  ;;  %v2420_v5 = vld [vmem:[%s2791_s8 + $0x100] sm:$0xff] }
 0x2fb   :  { %2814 = vst [vmem:[#allocation24_spill] sm:$0xff] %v2420_v5 }
 0x2fc   :  { %v989_v0 = vsel %vm988_vm5, %v984_v31, %v985_v28  ;;  %v1042_v30 = vsel %vm988_vm5, %v1039_v33, %v1040_v32  ;;  %v2430_v31 = vld [vmem:[%s2791_s8 + $0x110] sm:$0xff]  ;;  %v2436_v28 = vld [vmem:[%s2791_s8 + $0x118] sm:$0xff]  ;;  %v2526_v32 = vld [vmem:[%s2791_s8 + $0x1a8] sm:$0xff] }
 0x2fd   :  { %v991_v47 = vsel %vm990_vm4, %v987_v4, %v989_v0  ;;  %v2441_v4 = vld [vmem:[%s2791_s8 + $0x120] sm:$0xff]  ;;  %v2446_v0 = vld [vmem:[%s2791_s8 + $0x128] sm:$0xff]  ;;  %v2511_v33 = vld [vmem:[%s2791_s8 + $0x190] sm:$0xff] }
 0x2fe   :  { %993 = vst [vmem:[#allocation2] sm:$0xff] %v991_v47  ;;  %v2451_v47 = vld [vmem:[%s2791_s8 + $0x130] sm:$0xff] }
 0x2ff   :  { %v927_v19 = vpop.f32.mrf.mxu2  ;;  %2815 = vst [vmem:[#allocation25_spill] sm:$0xff] %v2441_v4 }
 0x300   :  { %v928_v21 = vadd.f32 %v927_v19, %v790_v62  ;;  %2816 = vst [vmem:[#allocation26_spill] sm:$0xff] %v2446_v0  ;;  %v2456_v19 = vld [vmem:[%s2791_s8 + $0x138] sm:$0xff] }
 0x301   :  { %2817 = vst [vmem:[#allocation27_spill] sm:$0xff] %v2456_v19 }
 0x302   :  { %v998_v20 = vrot.slane %v928_v21, 6  ;;  %1008 = vst.sshfl [vmem:[#allocation1 + $0x8] sm:$0xff pattern:$0x73625140] %v928_v21 }
 0x304   :  { %v1001_v14 = vsel %vm986_vm3, %v905_v2, %v998_v20  ;;  %v2481_v20 = vld [vmem:[%s2791_s8 + $0x160] sm:$0xff] }
 0x305   :  { %v1003_v42 = vsel %vm990_vm4, %v1001_v14, %v1002_v26  ;;  %2820 = vst [vmem:[#allocation30_spill] sm:$0xff] %v2481_v20  ;;  %v2491_v14 = vld [vmem:[%s2791_s8 + $0x170] sm:$0xff]  ;;  %v2496_v26 = vld [vmem:[%s2791_s8 + $0x178] sm:$0xff] }
 0x306   :  { %1006 = vst [vmem:[#allocation2 + $0x8] sm:$0xff] %v1003_v42  ;;  %v2501_v42 = vld [vmem:[%s2791_s8 + $0x180] sm:$0xff] }
 0x307   :  { %v930_v59 = vpop.f32.mrf.mxu2  ;;  %2821 = vst [vmem:[#allocation31_spill] sm:$0xff] %v2491_v14 }
 0x308   :  { %v2239_v45 = vadd.f32 %v930_v59, %v790_v62  ;;  %v2388_v62 = vld [vmem:[%s2791_s8 + $0xd0] sm:$0xff]  ;;  %v2506_v59 = vld [vmem:[%s2791_s8 + $0x188] sm:$0xff] }
 0x309   :  { %v1012_v55 = vld [vmem:[#allocation1 + $0x1] ss:$4 sm:$0xff] }
 0x30a   :  { %1015 = vst [vmem:[#allocation2 + $0x10] sm:$0xff] %v1012_v55  ;;  %v1038_v34 = vrot.slane %v2239_v45, 6  ;;  %v2516_v55 = vld [vmem:[%s2791_s8 + $0x198] sm:$0xff] }
 0x30b   :  { %1016 = vst.sshfl [vmem:[#allocation1] sm:$0xff pattern:$0x73625140] %v905_v2 }
 0x30c   :  { %1017 = vst.sshfl [vmem:[#allocation1 + $0x8] sm:$0xff pattern:$0x73625140] %v928_v21  ;;  %v1041_v46 = vsel %vm986_vm3, %v2242_v29, %v1038_v34  ;;  %v2521_v34 = vld [vmem:[%s2791_s8 + $0x1a0] sm:$0xff] }
 0x30d   :  { %1018 = vst.sshfl [vmem:[#allocation1 + $0x10] sm:$0xff pattern:$0x73625140] %v951_v9  ;;  %v1043_v35 = vsel %vm990_vm4, %v1041_v46, %v1042_v30  ;;  %v2531_v46 = vld [vmem:[%s2791_s8 + $0x1b0] sm:$0xff]  ;;  %v2536_v30 = vld [vmem:[%s2791_s8 + $0x1b8] sm:$0xff] }
 0x30e   :  { %1019 = vst.sshfl [vmem:[#allocation1 + $0x18] sm:$0xff pattern:$0x73625140] %v974_v50 }
 0x30f   :  { %1046 = vst [vmem:[#allocation2 + $0x28] sm:$0xff] %v1043_v35 }
 0x315   :  { %v1021_v24 = vld [vmem:[#allocation1 + $0x2] ss:$4 sm:$0xff] }
 0x316   :  { %1024 = vst [vmem:[#allocation2 + $0x18] sm:$0xff] %v1021_v24  ;;  %v2541_v24 = vld [vmem:[%s2791_s8 + $0x1c0] sm:$0xff] }
 0x317   :  { %1025 = vst.sshfl [vmem:[#allocation1] sm:$0xff pattern:$0x73625140] %v905_v2  ;;  %v2357_v2 = vld [vmem:[%s2791_s8 + $0xa0] sm:$0xff] }
 0x318   :  { %1028 = vst.sshfl [vmem:[#allocation1 + $0x18] sm:$0xff pattern:$0x73625140] %v974_v50 }
 0x319   :  { %1026 = vst.sshfl [vmem:[#allocation1 + $0x8] sm:$0xff pattern:$0x73625140] %v928_v21  ;;  %v2461_v21 = vld [vmem:[%s2791_s8 + $0x140] sm:$0xff] }
 0x31a   :  { %1027 = vst.sshfl [vmem:[#allocation1 + $0x10] sm:$0xff pattern:$0x73625140] %v951_v9  ;;  %v2393_v9 = vld [vmem:[%s2791_s8 + $0xd8] sm:$0xff] }
 0x31b   :  { %2809 = vst [vmem:[#allocation19_spill] sm:$0xff] %v2357_v2 }
 0x31c   :  { %2811 = vst [vmem:[#allocation21_spill] sm:$0xff] %v2393_v9 }
 0x31d   :  { %2818 = vst [vmem:[#allocation28_spill] sm:$0xff] %v2461_v21 }
 0x31e   :  { %2822 = vst [vmem:[#allocation32_spill] sm:$0xff] %v2541_v24 }
 0x321   :  { %v1030_v23 = vld [vmem:[#allocation1 + $0x3] ss:$4 sm:$0xff] }
 0x322   :  { %1033 = vst [vmem:[#allocation2 + $0x20] sm:$0xff] %v1030_v23  ;;  %v2546_v23 = vld [vmem:[%s2791_s8 + $0x1c8] sm:$0xff] }
 0x323   :  { %1048 = vst.sshfl [vmem:[#allocation1 + $0x8] sm:$0xff pattern:$0x73625140] %v2239_v45 }
 0x324   :  { %1047 = vst.sshfl [vmem:[#allocation1] sm:$0xff pattern:$0x73625140] %v2242_v29 }
 0x325   :  { %1049 = vst.sshfl [vmem:[#allocation1 + $0x10] sm:$0xff pattern:$0x73625140] %v2234_v60 }
 0x326   :  { %1050 = vst.sshfl [vmem:[#allocation1 + $0x18] sm:$0xff pattern:$0x73625140] %v2237_v27 }
 0x327   :  { %2823 = vst [vmem:[#allocation33_spill] sm:$0xff] %v2546_v23 }
 0x32d   :  { %v1052_v50 = vld [vmem:[#allocation1 + $0x1] ss:$4 sm:$0xff] }
 0x32e   :  { %1055 = vst [vmem:[#allocation2 + $0x30] sm:$0xff] %v1052_v50  ;;  %v2551_v50 = vld [vmem:[%s2791_s8 + $0x1d0] sm:$0xff] }
 0x32f   :  { %1056 = vst.sshfl [vmem:[#allocation1] sm:$0xff pattern:$0x73625140] %v2242_v29 }
 0x330   :  { %1057 = vst.sshfl [vmem:[#allocation1 + $0x8] sm:$0xff pattern:$0x73625140] %v2239_v45 }
 0x331   :  { %1058 = vst.sshfl [vmem:[#allocation1 + $0x10] sm:$0xff pattern:$0x73625140] %v2234_v60 }
 0x332   :  { %1059 = vst.sshfl [vmem:[#allocation1 + $0x18] sm:$0xff pattern:$0x73625140] %v2237_v27 }
 0x339   :  { %v1061_v35 = vld [vmem:[#allocation1 + $0x2] ss:$4 sm:$0xff] }
 0x33a   :  { %1064 = vst [vmem:[#allocation2 + $0x38] sm:$0xff] %v1061_v35  ;;  %v2567_v35 = vld [vmem:[%s2791_s8 + $0x1e8] sm:$0xff]  ;;  %s2671_s8 = smov 0  }
 0x33b   :  { %1065 = vst.sshfl [vmem:[#allocation1] sm:$0xff pattern:$0x73625140] %v2242_v29  ;;  %v2583_v29 = vld [vmem:[%s2793_s10] sm:$0xff] }
 0x33c   :  { %1066 = vst.sshfl [vmem:[#allocation1 + $0x8] sm:$0xff pattern:$0x73625140] %v2239_v45  ;;  %v2599_v45 = vld [vmem:[%s2793_s10 + $0x18] sm:$0xff] }
 0x33d   :  { %2825 = vst [vmem:[#allocation35_spill] sm:$0xff] %v2583_v29  ;;  %v2604_v29 = vld [vmem:[%s2793_s10 + $0x20] sm:$0xff] }
 0x33e   :  { %1067 = vst.sshfl [vmem:[#allocation1 + $0x10] sm:$0xff pattern:$0x73625140] %v2234_v60  ;;  %v2615_v60 = vld [vmem:[%s2793_s10 + $0x30] sm:$0xff] }
 0x33f   :  { %2828 = vst [vmem:[#allocation38_spill] sm:$0xff] %v2599_v45  ;;  %v2625_v45 = vld [vmem:[%s2793_s10 + $0x40] sm:$0xff] }
 0x340   :  { %2829 = vst [vmem:[#allocation39_spill] sm:$0xff] %v2604_v29  ;;  %v2630_v29 = vld [vmem:[%s2793_s10 + $0x48] sm:$0xff] }
 0x341   :  { %1068 = vst.sshfl [vmem:[#allocation1 + $0x18] sm:$0xff pattern:$0x73625140] %v2237_v27  ;;  %v2635_v27 = vld [vmem:[%s2793_s10 + $0x50] sm:$0xff] }
 0x342   :  { %2831 = vst [vmem:[#allocation41_spill] sm:$0xff] %v2615_v60  ;;  %v2645_v60 = vld [vmem:[%s2793_s10 + $0x60] sm:$0xff] }
 0x343   :  { %2833 = vst [vmem:[#allocation43_spill] sm:$0xff] %v2625_v45  ;;  %v2655_v45 = vld [vmem:[%s2793_s10 + $0x70] sm:$0xff] }
 0x344   :  { %2834 = vst [vmem:[#allocation44_spill] sm:$0xff] %v2630_v29  ;;  %v2660_v29 = vld [vmem:[%s2793_s10 + $0x78] sm:$0xff] }
 0x345   :  { %2835 = vst [vmem:[#allocation45_spill] sm:$0xff] %v2635_v27  ;;  %v2665_v27 = vld [vmem:[%s2794_s11] sm:$0x1] }
 0x346   :  { %2837 = vst [vmem:[#allocation47_spill] sm:$0xff] %v2645_v60  ;;  %v2667_v60 = vmov 0.0  }
 0x348   :  { %v1070_v17 = vld [vmem:[#allocation1 + $0x3] ss:$4 sm:$0xff] }
 0x349   :  { %1073 = vst [vmem:[#allocation2 + $0x40] sm:$0xff] %v1070_v17 }
 0x34a LB: > { %1207 = vmatpush.msra.mxu2 %v2572_v37  ;;  %v2839_v16 = vld [vmem:[#allocation34_spill] sm:$0xff]  ;;  %1187 = vmatpush.msra.mxu1 %v2567_v35  ;;  %v2840_v23 = vld [vmem:[#allocation33_spill] sm:$0xff]  ;;  %v2841_v24 = vld [vmem:[#allocation32_spill] sm:$0xff]  ;;  %s1480_s10 = sshll.u32 %s1590_s8, 3  ;;  %s1479_s7 = sshll.u32 %s1590_s8, 1  ;;  %s1590_s8 = sphi %s2671_s8, %s1160_s8   ;;  %v1586_v11 = vphi %v2669_v11, %v1328_v11   ;;  %v1582_v60 = vphi %v2667_v60, %v1326_v60  }
 0x34b   : > { %1227 = vmatpush.msra.mxu3 %v2839_v16  ;;  %1167 = vmatpush.msra.mxu0 %v2561_v25  ;;  %v2842_v14 = vld [vmem:[#allocation31_spill] sm:$0xff]  ;;  %v2843_v20 = vld [vmem:[#allocation30_spill] sm:$0xff]  ;;  %v2844_v22 = vld [vmem:[#allocation29_spill] sm:$0xff]  ;;  %s1165_s11 = scalar_lea.vmem [#allocation2], %s1480_s10  ;;  %s1353_s9 = scalar_lea.vmem [#allocation3], %s1479_s7 }
 0x34c   : > { %1208 = vmatpush.msra.mxu2 %v2551_v50  ;;  %1188 = vmatpush.msra.mxu1 %v2840_v23  ;;  %v2845_v21 = vld [vmem:[#allocation28_spill] sm:$0xff]  ;;  %v2846_v19 = vld [vmem:[#allocation27_spill] sm:$0xff]  ;;  %v2847_v0 = vld [vmem:[#allocation26_spill] sm:$0xff]  ;;  %s1160_s8 = sadd.s32 1, %s1590_s8  }
 0x34d   : > { %1228 = vmatpush.msra.mxu3 %v2556_v36  ;;  %1168 = vmatpush.msra.mxu0 %v2841_v24  ;;  %v2848_v4 = vld [vmem:[#allocation25_spill] sm:$0xff]  ;;  %v2849_v5 = vld [vmem:[#allocation24_spill] sm:$0xff]  ;;  %v2850_v15 = vld [vmem:[#allocation23_spill] sm:$0xff]  ;;  %p1157_p0 = scmp.ge.s32.totalorder %s1160_s8, 9  }
 0x34e   : > { %1209 = vmatpush.msra.mxu2 %v2531_v46  ;;  %1189 = vmatpush.msra.mxu1 %v2526_v32  ;;  %v2851_v10 = vld [vmem:[#allocation22_spill] sm:$0xff]  ;;  %v2852_v9 = vld [vmem:[#allocation21_spill] sm:$0xff]  ;;  %v2853_v3 = vld [vmem:[#allocation20_spill] sm:$0xff]  ;;  %s1361_s15 = sshll.u32 (%p1157_p0), %s2795_s12, 4  ;;  %s1595_s16 = smov (%p1157_p0), [#allocation3]   ;;  %s1362_s15 = int_to_ptr.hbm [resolvable:$true] %s1361_s15 }
 0x34f   : > { %1229 = vmatpush.msra.mxu3 %v2536_v30  ;;  %1169 = vmatpush.msra.mxu0 %v2521_v34  ;;  %v2854_v2 = vld [vmem:[#allocation19_spill] sm:$0xff]  ;;  %v2855_v1 = vld [vmem:[#allocation18_spill] sm:$0xff]  ;;  %v2856_v8 = vld [vmem:[#allocation17_spill] sm:$0xff]  ;;  %s1359_s1 = sshll.u32 (%p1157_p0), %s1595_s16, 4  ;;  %s1596_s17 = smov (%p1157_p0), 32   ;;  %s1360_s1 = int_to_ptr.vmem [resolvable:$true] %s1359_s1 }
 0x350   : > { %1210 = vmatpush.msra.mxu2 %v2511_v33  ;;  %1190 = vmatpush.msra.mxu1 %v2506_v59  ;;  %v2857_v6 = vld [vmem:[#allocation16_spill] sm:$0xff]  ;;  %v2858_v7 = vld [vmem:[#allocation15_spill] sm:$0xff]  ;;  %v2859_v13 = vld [vmem:[#allocation14_spill] sm:$0xff]  ;;  %s1597_s18 = smov (%p1157_p0), 2  }
 0x351   : > { %1230 = vmatpush.msra.mxu3 %v2516_v55  ;;  %1170 = vmatpush.msra.mxu0 %v2501_v42  ;;  %v2860_v12 = vld [vmem:[#allocation13_spill] sm:$0xff]  ;;  %v2861_v18 = vld [vmem:[#allocation12_spill] sm:$0xff]  ;;  %v2862_v17 = vld [vmem:[#allocation11_spill] sm:$0xff] }
 0x352   : > { %1211 = vmatpush.msra.mxu2 %v2842_v14  ;;  %1191 = vmatpush.msra.mxu1 %v2486_v54 }
 0x353   : > { %1231 = vmatpush.msra.mxu3 %v2496_v26  ;;  %1171 = vmatpush.msra.mxu0 %v2843_v20 }
 0x354   : > { %1212 = vmatpush.msra.mxu2 %v2844_v22  ;;  %1192 = vmatpush.msra.mxu1 %v2466_v57 }
 0x355   : > { %1232 = vmatpush.msra.mxu3 %v2476_v52  ;;  %1172 = vmatpush.msra.mxu0 %v2845_v21 }
 0x356   : > { %1213 = vmatpush.msra.mxu2 %v2451_v47  ;;  %1193 = vmatpush.msra.mxu1 %v2847_v0  ;;  %v2863_v0 = vld [vmem:[#allocation10_spill] sm:$0xff] }
 0x357   : > { %1233 = vmatpush.msra.mxu3 %v2846_v19  ;;  %1173 = vmatpush.msra.mxu0 %v2848_v4  ;;  %v2867_v4 = vld [vmem:[#allocation6_spill] sm:$0xff] }
 0x358   : > { %1214 = vmatpush.msra.mxu2 %v2430_v31  ;;  %1194 = vmatpush.msra.mxu1 %v2425_v41 }
 0x359   : > { %1234 = vmatpush.msra.mxu3 %v2436_v28  ;;  %1174 = vmatpush.msra.mxu0 %v2849_v5  ;;  %v2874_v5 = vld [vmem:[#allocation42_spill] sm:$0xff] }
 0x35a   : > { %1215 = vmatpush.msra.mxu2 %v2409_v58  ;;  %1195 = vmatpush.msra.mxu1 %v2404_v56 }
 0x35b   : > { %1235 = vmatpush.msra.mxu3 %v2850_v15  ;;  %1175 = vmatpush.msra.mxu0 %v2851_v10 }
 0x35c   : > { %1216 = vmatpush.msra.mxu2 %v2388_v62  ;;  %1196 = vmatpush.msra.mxu1 %v2382_v61 }
 0x35d   : > { %1236 = vmatpush.msra.mxu3 %v2852_v9  ;;  %1176 = vmatpush.msra.mxu0 %v2377_v63 }
 0x35e   : > { %1217 = vmatpush.msra.mxu2 %v2367_v51  ;;  %1197 = vmatpush.msra.mxu1 %v2853_v3  ;;  %v2866_v3 = vld [vmem:[#allocation7_spill] sm:$0xff] }
 0x35f   : > { %1237 = vmatpush.msra.mxu3 %v2372_v53  ;;  %1177 = vmatpush.msra.mxu0 %v2854_v2  ;;  %v2865_v2 = vld [vmem:[#allocation9_spill] sm:$0xff] }
 0x360   : > { %1218 = vmatpush.msra.mxu2 %v2855_v1  ;;  %1198 = vmatpush.msra.mxu1 %v2856_v8  ;;  %v2864_v1 = vld [vmem:[#allocation8_spill] sm:$0xff]  ;;  %v2878_v8 = vld [vmem:[#allocation38_spill] sm:$0xff] }
 0x361   : > { %1238 = vmatpush.msra.mxu3 %v2352_v49  ;;  %1178 = vmatpush.msra.mxu0 %v2337_v48 }
 0x362   : > { %1219 = vmatpush.msra.mxu2 %v2857_v6  ;;  %1199 = vmatpush.msra.mxu1 %v2858_v7  ;;  %v2876_v6 = vld [vmem:[#allocation40_spill] sm:$0xff]  ;;  %v2877_v7 = vld [vmem:[#allocation39_spill] sm:$0xff] }
 0x363   : > { %1239 = vmatpush.msra.mxu3 %v2332_v44  ;;  %1179 = vmatpush.msra.mxu0 %v2317_v43 }
 0x364   : > { %1220 = vmatpush.msra.mxu2 %v2307_v40  ;;  %1200 = vmatpush.msra.mxu1 %v2860_v12 }
 0x365   : > { %1240 = vmatpush.msra.mxu3 %v2859_v13  ;;  %1180 = vmatpush.msra.mxu0 %v2297_v39 }
 0x366   : > { %1221 = vmatpush.msra.mxu2 %v2287_v38  ;;  %1201 = vmatpush.msra.mxu1 %v2862_v17  ;;  %v2871_v17 = vld [vmem:[#allocation45_spill] sm:$0xff] }
 0x367   : > { %1241 = vmatpush.msra.mxu3 %v2861_v18  ;;  %1181 = vmatpush.msra.mxu0 %v2863_v0  ;;  %v2868_v0 = vld [vmem:[#allocation48_spill] sm:$0xff] }
 0x368   : > { %1222 = vmatpush.msra.mxu2 %v2864_v1  ;;  %1202 = vmatpush.msra.mxu1 %v2866_v3  ;;  %v2869_v1 = vld [vmem:[#allocation47_spill] sm:$0xff]  ;;  %v2872_v3 = vld [vmem:[#allocation44_spill] sm:$0xff] }
 0x369   : > { %1242 = vmatpush.msra.mxu3 %v2865_v2  ;;  %1223 = vmatmul.f32.vlgmr.msra.gmra.mxu2 %v1586_v11  ;;  %v2870_v2 = vld [vmem:[#allocation46_spill] sm:$0xff] }
 0x36a   : > { %1243 = vmatmul.f32.vlgmr.msra.gmra.mxu3 %v1586_v11  ;;  %1182 = vmatpush.msra.mxu0 %v2867_v4  ;;  %v2873_v4 = vld [vmem:[#allocation43_spill] sm:$0xff] }
 0x36b   : > { %1203 = vmatmul.f32.vlgmr.msra.gmra.mxu1 %v1586_v11  ;;  %1183 = vmatmul.f32.vlgmr.msra.gmra.mxu0 %v1586_v11  ;;  %v2875_v11 = vld [vmem:[#allocation41_spill] sm:$0xff] }
 0x36c   : > { %1332 = vmatpush.msrb.mxu0 %v2660_v29 }
 0x36e   : > { %1333 = vmatpush.msrb.mxu0 %v2655_v45 }
 0x370   : > { %1334 = vmatpush.msrb.mxu0 %v2868_v0  ;;  %v2879_v0 = vld [vmem:[#allocation37_spill] sm:$0xff] }
 0x372   : > { %1335 = vmatpush.msrb.mxu0 %v2869_v1  ;;  %v2880_v1 = vld [vmem:[#allocation36_spill] sm:$0xff] }
 0x374   : > { %1336 = vmatpush.msrb.mxu0 %v2870_v2  ;;  %v2881_v2 = vld [vmem:[#allocation35_spill] sm:$0xff] }
 0x376   : > { %1337 = vmatpush.msrb.mxu0 %v2871_v17 }
 0x378   : > { %1338 = vmatpush.msrb.mxu0 %v2872_v3 }
 0x37a   : > { %1339 = vmatpush.msrb.mxu0 %v2873_v4 }
 0x37c   : > { %1340 = vmatpush.msrb.mxu0 %v2874_v5 }
 0x37e   : > { %1341 = vmatpush.msrb.mxu0 %v2875_v11 }
 0x380   : > { %1342 = vmatpush.msrb.mxu0 %v2876_v6 }
 0x382   : > { %1343 = vmatpush.msrb.mxu0 %v2877_v7  ;;  %v1166_v7 = vld [vmem:[%s1165_s11] sm:$0xff] }
 0x384   : > { %1344 = vmatpush.msrb.mxu0 %v2878_v8 }
 0x386   : > { %1345 = vmatpush.msrb.mxu0 %v2879_v0 }
 0x388   : > { %1346 = vmatpush.msrb.mxu0 %v2880_v1 }
 0x38a   : > { %1347 = vmatpush.msrb.mxu0 %v2881_v2 }
 0x3e8   : > { %v1204_v17 = vpop.f32.mrf.mxu1  ;;  %v1184_v4 = vpop.f32.mrf.mxu0 }
 0x3e9   : > { %v1251_v3 = vrot.slane %v1204_v17, 6 }
 0x3eb   : > { %v1254_v6 = vsel %vm986_vm3, %v1184_v4, %v1251_v3 }
 0x3ec   : > { %v1224_v9 = vpop.f32.mrf.mxu2 }
 0x3ed   : > { %v1244_v5 = vpop.f32.mrf.mxu3  ;;  %v1252_v10 = vrot.slane %v1224_v9, 4 }
 0x3ee   : > { %v1253_v11 = vrot.slane %v1244_v5, 2 }
 0x3f0   : > { %v1255_v8 = vsel %vm988_vm5, %v1252_v10, %v1253_v11 }
 0x3f1   : > { %v1256_v0 = vsel %vm990_vm4, %v1254_v6, %v1255_v8 }
 0x3f2   : > { %v1258_v12 = vadd.f32 %v1256_v0, %v1166_v7 }
 0x3f4   : > { %v1476_v1 = vmul.f32 -1.442695, %v1258_v12  ;;  %v1279_v13 = vrot.slane %v1258_v12, 2  ;;  %v1303_v2 = vrot.slane %v1258_v12, 6  ;;  %v1300_v7 = vrot.slane %v1258_v12, 4 }
 0x3f6   : > { %1526 = vpow2.f32 %v1476_v1  ;;  %v1477_v14 = vmul.f32 -1.442695, %v1279_v13  ;;  %v1478_v17 = vmul.f32 -1.442695, %v1303_v2 }
 0x3f8   : > { %1528 = vpow2.f32 %v1477_v14 }
 0x3f9   : > { %1530 = vpow2.f32 %v1478_v17 }
 0x3fc   : > { %v1527_v15 = vpop.eup %1526 }
 0x3fd   : > { %v1262_v9 = vadd.f32 1.0, %v1527_v15 }
 0x3fe   : > { %v1529_v5 = vpop.eup %1528 }
 0x3ff   : > { %v1531_v16 = vpop.eup %1530  ;;  %1532 = vrcp.f32 %v1262_v9  ;;  %v1284_v3 = vadd.f32 1.0, %v1529_v5  ;;  %v1274_v13 = vand.u32 2147483648, %v1262_v9  ;;  %v1272_v17 = vand.u32 2147483647, %v1262_v9 }
 0x400   : > { %v1308_v4 = vadd.f32 1.0, %v1531_v16  ;;  %vm1268_vm7 = vweird.f32 %v1262_v9 }
 0x401   : > { %1534 = vrcp.f32 %v1284_v3  ;;  %v1296_v18 = vand.u32 2147483648, %v1284_v3  ;;  %v1294_v19 = vand.u32 2147483647, %v1284_v3  ;;  %v1275_v20 = vor.u32 1.1754944e-38, %v1274_v13 }
 0x402   : > { %1536 = vrcp.f32 %v1308_v4  ;;  %vm1273_vm10 = vcmp.eq.f32.partialorder %v1272_v17, 8.507059e+37  ;;  %vm1290_vm11 = vweird.f32 %v1284_v3  ;;  %v1320_v13 = vand.u32 2147483648, %v1308_v4 }
 0x403   : > { %1538 = vtanh.f32 %v1300_v7  ;;  %vm1295_vm13 = vcmp.eq.f32.partialorder %v1294_v19, 8.507059e+37  ;;  %vm1314_vm15 = vweird.f32 %v1308_v4 }
 0x405   : > { %v1533_v10 = vpop.eup %1532 }
 0x406   : > { %v1264_v11 = vmul.f32 %v1533_v10, %v1262_v9  ;;  %vm1269_vm6 = vweird.f32 %v1533_v10 }
 0x407   : > { %v1535_v6 = vpop.eup %1534  ;;  %vm1270_vm9 = vmor %vm1268_vm7, %vm1269_vm6 }
 0x408   : > { %v1537_v8 = vpop.eup %1536  ;;  %v1265_v0 = vsub.f32 1.0, %v1264_v11  ;;  %v1286_v1 = vmul.f32 %v1535_v6, %v1284_v3  ;;  %vm1291_vm8 = vweird.f32 %v1535_v6  ;;  %v1321_v3 = vor.u32 1.1754944e-38, %v1320_v13 }
 0x409   : > { %v1310_v2 = vmul.f32 %v1537_v8, %v1308_v4  ;;  %vm1292_vm12 = vmor %vm1290_vm11, %vm1291_vm8  ;;  %vm1315_vm14 = vweird.f32 %v1537_v8 }
 0x40a   : > { %v1266_v14 = vmul.f32 %v1533_v10, %v1265_v0  ;;  %v1287_v15 = vsub.f32 1.0, %v1286_v1  ;;  %v1297_v0 = vor.u32 1.1754944e-38, %v1296_v18  ;;  %v1539_v1 = vpop.eup %1538  ;;  %vm1316_vm0 = vmor %vm1314_vm15, %vm1315_vm14 }
 0x40b   : > { %v1311_v21 = vsub.f32 1.0, %v1310_v2 }
 0x40c   : > { %v1267_v5 = vadd.f32 %v1533_v10, %v1266_v14  ;;  %v1288_v16 = vmul.f32 %v1535_v6, %v1287_v15 }
 0x40d   : > { %v1312_v9 = vmul.f32 %v1537_v8, %v1311_v21  ;;  %v1330_v21 = vperm.slane %v2665_v27, 0 }
 0x40e   : > { %v1271_v12 = vsel %vm1270_vm9, %v1533_v10, %v1267_v5  ;;  %v1289_v11 = vadd.f32 %v1535_v6, %v1288_v16  ;;  %v1318_v10 = vand.u32 2147483647, %v1308_v4 }
 0x40f   : > { %v1276_v22 = vsel %vm1273_vm10, %v1275_v20, %v1271_v12  ;;  %v1313_v24 = vadd.f32 %v1537_v8, %v1312_v9 }
 0x410   : > { %v1293_v23 = vsel %vm1292_vm12, %v1535_v6, %v1289_v11  ;;  %v1325_v15 = vmul.f32 %v1539_v1, %v1276_v22  ;;  %vm1319_vm1 = vcmp.eq.f32.partialorder %v1318_v10, 8.507059e+37 }
 0x411   : > { %v1298_v7 = vsel %vm1295_vm13, %v1297_v0, %v1293_v23  ;;  %v1317_v20 = vsel %vm1316_vm0, %v1537_v8, %v1313_v24 }
 0x412   : > { %v1324_v14 = vmul.f32 %v1582_v60, %v1298_v7  ;;  %v1322_v19 = vsel %vm1319_vm1, %v1321_v3, %v1317_v20 }
 0x414   : > { %v1326_v60 = vadd.f32 %v1325_v15, %v1324_v14  }
 0x416   : > { %1540 = vtanh.f32 %v1326_v60 }
 0x41c   : > { %v1541_v18 = vpop.eup %1540 }
 0x41d   : > { %v1328_v11 = vmul.f32 %v1541_v18, %v1322_v19  }
 0x41f   : > { %1348 = vmatmul.f32.vlgmr.msrb.gmra.mxu0 %v1328_v11 }
 0x49b   :  { %1159 = sbr.rel (!%p1157_p0) target bundleno = 842 (0x34a), region = 91 }
 0x49c   : > { %v1349_v22 = vpop.f32.mrf.mxu0 }
 0x49d   : > { %v1350_v23 = vadd.f32 %v1349_v22, %v1330_v21 }
 0x49f   : > { %1354 = vst [vmem:[%s1353_s9] sm:$0x3] %v1350_v23 }
 0x4a0   :  { %1367 = dma.vmem_to_hbm [thread:$0]  %s1360_s1, 288, %s1362_s15, [#allocation4], %s1596_s17, %s1596_s17, %s1597_s18  }
 0x4a1   :  { %1578 = dma.done.wait [#allocation4], 288  }
 0x4a2   :  { %1579 = vsyncadd [#allocation4], 4294967008 }
 0x4a3   :  { %1372 = vsyncpa [#allocation4], 1 }

</bundles_post_ra>
